<compile_context>
chip_gen: v7x
topology: tpu7x:2x2x1
jax: 0.10.0
libtpu: 0.0.40
codegen_flags: <defaults>
</compile_context>

<pallas_src>
import functools

import jax
import jax.numpy as jnp
from jax.experimental import pallas as pl
from jax.experimental.pallas import tpu as pltpu


def _round_up(x, m):
    return ((x + m - 1) // m) * m


def _pick_row_tile(ny, nx, cin, coutp, max_rows=16, target_bytes=4 * 1024 * 1024):
    """Rows per spatial tile: divides ny, <= max_rows, block <= target_bytes."""
    bytes_per_row = nx * (cin * 2 + coutp * 4 * 3)     # x bf16 + c0/feat/z f32
    rows = max(1, min(ny, max_rows, target_bytes // max(bytes_per_row, 1)))
    while ny % rows:
        rows -= 1
    return int(rows)


# --------------------------------------------------------------------------- #
# Pallas kernel
# --------------------------------------------------------------------------- #
def _make_idetect_kernel(rows, nx, cin, coutp):
    def kernel(x_ref, w_ref, pkt_ref, c0_ref, feat_ref, z_ref):
        # x block: (1, rows, nx, cin) bf16 ; w: (cin, coutp) bf16
        x = x_ref[0].reshape(rows * nx, cin)
        acc = jnp.dot(x, w_ref[...], preferred_element_type=jnp.float32)

        # pkt rows: 0 = folded bias, 1 = c1, 2 = c2 (f32)
        feat = (acc + pkt_ref[0]).reshape(rows, nx, coutp)
        feat_ref[0] = feat.astype(feat_ref.dtype)

        # decode: z = c2*sig^2 + c1*sig + c0   (c0 precomputed, grid-constant)
        #   xy channels : c1 = 2*stride, c0 = (g-0.5)*stride
        #   wh channels : c2 = 4*anchor
        #   obj/class   : c1 = 1
        sig = jax.nn.sigmoid(feat)
        z = (pkt_ref[2] * sig + pkt_ref[1]) * sig + c0_ref[...]
        z_ref[0] = z.astype(z_ref.dtype)

    return kernel


def idetect_level_pallas(x_nhwc, w_pad, pkt, c0):
    """One detection level. x_nhwc: (bs, ny, nx, cin) bf16. Returns padded (feat, z)."""
    bs, ny, nx, cin = x_nhwc.shape
    coutp = w_pad.shape[1]
    rows = _pick_row_tile(ny, nx, cin, coutp)
    nrt = ny // rows
    kernel = _make_idetect_kernel(rows, nx, cin, coutp)

    out_spec = pl.BlockSpec((1, rows, nx, coutp), lambda r, b: (b, r, 0, 0))
    feat, z = pl.pallas_call(
        kernel,
        out_shape=(
            jax.ShapeDtypeStruct((bs, ny, nx, coutp), jnp.float32),
            jax.ShapeDtypeStruct((bs, ny, nx, coutp), jnp.float32),
        ),
        grid=(nrt, bs),                                   # batch innermost: c0 stays resident
        in_specs=[
            pl.BlockSpec((1, rows, nx, cin), lambda r, b: (b, r, 0, 0)),
            pl.BlockSpec((cin, coutp), lambda r, b: (0, 0)),
            pl.BlockSpec((8, coutp), lambda r, b: (0, 0)),         # packed b/c1/c2
            pl.BlockSpec((rows, nx, coutp), lambda r, b: (r, 0, 0)),  # c0 tile
        ],
        out_specs=(out_spec, out_spec),
        compiler_params=pltpu.CompilerParams(
            dimension_semantics=("parallel", "parallel"),
            vmem_limit_bytes=32 * 1024 * 1024,
        ),
    )(x_nhwc, w_pad, pkt, c0)
    return feat, z


# --------------------------------------------------------------------------- #
# Full forward (jitted so the layout glue fuses with the kernels)
# --------------------------------------------------------------------------- #
@functools.partial(jax.jit, static_argnames=("strides", "na", "no"))
def idetect_forward_pallas(xs_nchw, params, anchors, strides, na, no):
    """xs_nchw: tuple of (bs, cin, ny, nx). Returns (z_cat, xs_out)."""
    cout = na * no
    coutp = _round_up(max(cout, 128), 128)    # lane-dense output width

    z_all, xs_out = [], []
    for i, x_nchw in enumerate(xs_nchw):
        ia, w, b, im = params[i]
        bs, cin, ny, nx = x_nchw.shape
        stride = float(strides[i])

        # Fold ImplicitA (add) and ImplicitM (mul) into the conv weight / bias.
        w_fold = w * im[None, :]                 # (cin, cout)
        b_fold = (b + ia @ w) * im               # (cout,)

        # Per-channel decode coefficients (along cout).
        c1 = jnp.ones((cout,), jnp.float32)
        c1 = c1.at[0::no].set(2.0 * stride).at[1::no].set(2.0 * stride)
        c1 = c1.at[2::no].set(0.0).at[3::no].set(0.0)
        c2 = jnp.zeros((cout,), jnp.float32)
        c2 = c2.at[2::no].set(4.0 * anchors[i][:, 0])
        c2 = c2.at[3::no].set(4.0 * anchors[i][:, 1])
        mx = jnp.zeros((cout,), jnp.float32).at[0::no].set(stride)
        my = jnp.zeros((cout,), jnp.float32).at[1::no].set(stride)

        pad = coutp - cout
        # bf16 matmul operands (f32 accumulate + f32 epilogue in the kernel).
        w_pad = jnp.pad(w_fold, ((0, 0), (0, pad))).astype(jnp.bfloat16)
        # Pack bias / c1 / c2 into one (8, coutp) f32 slab (rows 3..7 unused).
        pkt = jnp.zeros((8, coutp), jnp.float32)
        pkt = pkt.at[0, :cout].set(b_fold).at[1, :cout].set(c1).at[2, :cout].set(c2)

        # Grid-constant decode offset, precomputed once: (ny, nx, coutp).
        gy = jnp.arange(ny, dtype=jnp.float32)
        gx = jnp.arange(nx, dtype=jnp.float32)
        c0 = ((gx[None, :, None] - 0.5) * mx[None, None, :]
              + (gy[:, None, None] - 0.5) * my[None, None, :])
        c0 = jnp.pad(c0, ((0, 0), (0, 0), (0, pad)))

        # NCHW -> NHWC glue + bf16 shrink of the dominant HBM read.
        x_nhwc = jnp.transpose(x_nchw, (0, 2, 3, 1)).astype(jnp.bfloat16)
        feat, z = idetect_level_pallas(x_nhwc, w_pad, pkt, c0)

        feat = feat[..., :cout]
        z = z[..., :cout]
        # (bs, ny, nx, na*no) -> (bs, na, ny, nx, no)  (matches torch view+permute)
        feat_t = jnp.transpose(feat.reshape(bs, ny, nx, na, no), (0, 3, 1, 2, 4))
        z_t = jnp.transpose(z.reshape(bs, ny, nx, na, no), (0, 3, 1, 2, 4))
        xs_out.append(feat_t)
        z_all.append(z_t.reshape(bs, na * ny * nx, no))

    return jnp.concatenate(z_all, axis=1), tuple(xs_out)


# --------------------------------------------------------------------------- #
# Pure-JAX reference (mirrors the PyTorch forward, full f32)
# --------------------------------------------------------------------------- #
def idetect_forward_ref(xs_nchw, params, anchors, strides, na, no):
    z_all, xs_out = [], []
    for i, x in enumerate(xs_nchw):
        ia, w, b, im = params[i]
        bs, cin, ny, nx = x.shape
        xi = x + ia.reshape(1, cin, 1, 1)
        conv = jnp.einsum("bchw,co->bohw", xi, w) + b.reshape(1, -1, 1, 1)
        conv = conv * im.reshape(1, -1, 1, 1)
        feat = jnp.transpose(conv.reshape(bs, na, no, ny, nx), (0, 1, 3, 4, 2))
        xs_out.append(feat)
        y = jax.nn.sigmoid(feat)
        gy, gx = jnp.meshgrid(jnp.arange(ny), jnp.arange(nx), indexing="ij")
        grid = jnp.stack([gx, gy], -1).reshape(1, 1, ny, nx, 2).astype(jnp.float32)
        xy = (y[..., 0:2] * 2.0 - 0.5 + grid) * strides[i]
        wh = (y[..., 2:4] * 2.0) ** 2 * anchors[i].reshape(1, na, 1, 1, 2)
        y = jnp.concatenate([xy, wh, y[..., 4:]], axis=-1)
        z_all.append(y.reshape(bs, -1, no))
    return jnp.concatenate(z_all, axis=1), xs_out


# --------------------------------------------------------------------------- #
# Main
# --------------------------------------------------------------------------- #
if __name__ == "__main__":
    key = jax.random.PRNGKey(0)

    nc = 15                      # number of classes
    no = nc + 5                  # outputs per anchor
    anchors_list = [
        [10, 13, 16, 30, 33, 23],
        [30, 61, 62, 45, 59, 119],
        [116, 90, 156, 198, 373, 326],
    ]
    nl = len(anchors_list)
    na = len(anchors_list[0]) // 2
    anchors = jnp.asarray(anchors_list, jnp.float32).reshape(nl, na, 2)
    strides = (8.0, 16.0, 32.0)

    ch = (16, 32, 64)                       # input channels per level
    spatial = [(32, 32), (16, 16), (8, 8)]  # level 0 exercises the multi-row-tile path
    bs = 2
    cout = na * no

    # Deterministic parameter init (synthetic, matches shapes in __init__)
    params, xs = [], []
    for i, cin in enumerate(ch):
        key, k_ia, k_w, k_b, k_im, k_x = jax.random.split(key, 6)
        ia = 0.02 * jax.random.normal(k_ia, (cin,), jnp.float32)            # ImplicitA
        w = 0.01 * jax.random.normal(k_w, (cin, cout), jnp.float32)         # conv weight (Cin,Cout)
        b = 0.01 * jax.random.normal(k_b, (cout,), jnp.float32)             # conv bias
        im = 1.0 + 0.02 * jax.random.normal(k_im, (cout,), jnp.float32)     # ImplicitM
        params.append((ia, w, b, im))
        ny, nx = spatial[i]
        xs.append(jax.random.normal(k_x, (bs, cin, ny, nx), jnp.float32))   # NCHW input

    params = tuple(params)
    xs = tuple(xs)

    # Run Pallas kernels (whole forward under one jit)
    z_pl, feats_pl = idetect_forward_pallas(xs, params, anchors, strides, na, no)
    z_pl = jax.block_until_ready(z_pl)
    feats_pl = [jax.block_until_ready(f) for f in feats_pl]

    # Reference check (f32 reference vs. bf16-matmul kernel -> bf16-appropriate tolerances)
    z_ref, feats_ref = idetect_forward_ref(xs, params, anchors, strides, na, no)

    assert z_pl.shape == (bs, na * sum(h * w for h, w in spatial), no), z_pl.shape
    assert jnp.allclose(z_pl, z_ref, rtol=1e-2, atol=0.15), "decoded outputs mismatch"
    for fp, fr in zip(feats_pl, feats_ref):
        assert fp.shape == fr.shape
        assert jnp.allclose(fp, fr, rtol=1e-2, atol=1e-2), "feature maps mismatch"

    print("KERNEL_OK")
</pallas_src>

<mosaic_0001>
module attributes {stable_mosaic.version = 11 : i64} {
  func.func @kernel(%arg0: i32, %arg1: i32, %arg2: memref<1x16x16x32xbf16, #tpu.memory_space<vmem>>, %arg3: memref<32x128xbf16, #tpu.memory_space<vmem>>, %arg4: memref<8x128xf32, #tpu.memory_space<vmem>>, %arg5: memref<16x16x128xf32, #tpu.memory_space<vmem>>, %arg6: memref<1x16x16x128xf32, #tpu.memory_space<vmem>>, %arg7: memref<1x16x16x128xf32, #tpu.memory_space<vmem>>) attributes {dimension_semantics = [#tpu.dimension_semantics<parallel>, #tpu.dimension_semantics<parallel>], iteration_bounds = array<i64: 1, 2>, scalar_prefetch = 0 : i64, scratch_operands = 0 : i64, tpu.core_type = #tpu.core_type<tc>, window_params = [{transform_indices = @transform_0, window_bounds = array<i64: 1, 16, 16, 32>}, {pipeline_mode = #tpu.pipeline_mode<synchronous>, transform_indices = @transform_1, window_bounds = array<i64: 32, 128>}, {pipeline_mode = #tpu.pipeline_mode<synchronous>, transform_indices = @transform_2, window_bounds = array<i64: 8, 128>}, {transform_indices = @transform_3, window_bounds = array<i64: 16, 16, 128>}, {transform_indices = @transform_4, window_bounds = array<i64: 1, 16, 16, 128>}, {transform_indices = @transform_5, window_bounds = array<i64: 1, 16, 16, 128>}]} {
    %c0 = arith.constant 0 : index
    %c0_0 = arith.constant 0 : index
    %c0_1 = arith.constant 0 : index
    %c0_2 = arith.constant 0 : index
    %0 = vector.load %arg2[%c0, %c0_0, %c0_1, %c0_2] : memref<1x16x16x32xbf16, #tpu.memory_space<vmem>>, vector<1x16x16x32xbf16>
    %1 = vector.shape_cast %0 : vector<1x16x16x32xbf16> to vector<16x16x32xbf16>
    %2 = vector.shape_cast %1 : vector<16x16x32xbf16> to vector<256x32xbf16>
    %c0_3 = arith.constant 0 : index
    %c0_4 = arith.constant 0 : index
    %3 = vector.load %arg3[%c0_3, %c0_4] : memref<32x128xbf16, #tpu.memory_space<vmem>>, vector<32x128xbf16>
    %cst = arith.constant dense<0.000000e+00> : vector<256x128xf32>
    %4 = tpu.matmul %2, %3, %cst {dimension_numbers = #tpu.dot_dimension_numbers<[1], [0], [0], [1], [0, 0, 1, 1], [], []>} : vector<256x32xbf16>, vector<32x128xbf16>, vector<256x128xf32> -> vector<256x128xf32>
    %c0_5 = arith.constant 0 : index
    %c0_6 = arith.constant 0 : index
    %5 = vector.load %arg4[%c0_5, %c0_6] : memref<8x128xf32, #tpu.memory_space<vmem>>, vector<1x128xf32>
    %6 = vector.shape_cast %5 : vector<1x128xf32> to vector<128xf32>
    %7 = vector.shape_cast %6 : vector<128xf32> to vector<1x128xf32>
    %8 = vector.broadcast %7 : vector<1x128xf32> to vector<256x128xf32>
    %9 = arith.addf %4, %8 : vector<256x128xf32>
    %10 = vector.shape_cast %9 : vector<256x128xf32> to vector<16x16x128xf32>
    %c0_7 = arith.constant 0 : index
    %c0_8 = arith.constant 0 : index
    %c0_9 = arith.constant 0 : index
    %c0_10 = arith.constant 0 : index
    %11 = vector.load %arg6[%c0_7, %c0_8, %c0_9, %c0_10] : memref<1x16x16x128xf32, #tpu.memory_space<vmem>>, vector<1x16x16x128xf32>
    %12 = vector.shape_cast %11 : vector<1x16x16x128xf32> to vector<16x16x128xf32>
    %13 = vector.shape_cast %10 : vector<16x16x128xf32> to vector<1x16x16x128xf32>
    tpu.vector_store %arg6[%c0_7, %c0_8, %c0_9, %c0_10], %13 {strides = array<i32>} : memref<1x16x16x128xf32, #tpu.memory_space<vmem>>, vector<1x16x16x128xf32>,
    %14 = arith.negf %10 : vector<16x16x128xf32>
    %15 = math.exp %14 : vector<16x16x128xf32>
    %cst_11 = arith.constant 1.000000e+00 : f32
    %16 = vector.broadcast %cst_11 : f32 to vector<16x16x128xf32>
    %17 = arith.addf %16, %15 : vector<16x16x128xf32>
    %18 = arith.divf %16, %17 : vector<16x16x128xf32>
    %c2 = arith.constant 2 : index
    %c0_12 = arith.constant 0 : index
    %19 = vector.load %arg4[%c2, %c0_12] : memref<8x128xf32, #tpu.memory_space<vmem>>, vector<1x128xf32>
    %20 = vector.shape_cast %19 : vector<1x128xf32> to vector<128xf32>
    %21 = vector.shape_cast %20 : vector<128xf32> to vector<1x1x128xf32>
    %22 = vector.broadcast %21 : vector<1x1x128xf32> to vector<16x16x128xf32>
    %23 = arith.mulf %22, %18 : vector<16x16x128xf32>
    %c1 = arith.constant 1 : index
    %c0_13 = arith.constant 0 : index
    %24 = vector.load %arg4[%c1, %c0_13] : memref<8x128xf32, #tpu.memory_space<vmem>>, vector<1x128xf32>
    %25 = vector.shape_cast %24 : vector<1x128xf32> to vector<128xf32>
    %26 = vector.shape_cast %25 : vector<128xf32> to vector<1x1x128xf32>
    %27 = vector.broadcast %26 : vector<1x1x128xf32> to vector<16x16x128xf32>
    %28 = arith.addf %23, %27 : vector<16x16x128xf32>
    %29 = arith.mulf %28, %18 : vector<16x16x128xf32>
    %c0_14 = arith.constant 0 : index
    %c0_15 = arith.constant 0 : index
    %c0_16 = arith.constant 0 : index
    %30 = vector.load %arg5[%c0_14, %c0_15, %c0_16] : memref<16x16x128xf32, #tpu.memory_space<vmem>>, vector<16x16x128xf32>
    %31 = arith.addf %29, %30 : vector<16x16x128xf32>
    %c0_17 = arith.constant 0 : index
    %c0_18 = arith.constant 0 : index
    %c0_19 = arith.constant 0 : index
    %c0_20 = arith.constant 0 : index
    %32 = vector.load %arg7[%c0_17, %c0_18, %c0_19, %c0_20] : memref<1x16x16x128xf32, #tpu.memory_space<vmem>>, vector<1x16x16x128xf32>
    %33 = vector.shape_cast %32 : vector<1x16x16x128xf32> to vector<16x16x128xf32>
    %34 = vector.shape_cast %31 : vector<16x16x128xf32> to vector<1x16x16x128xf32>
    tpu.vector_store %arg7[%c0_17, %c0_18, %c0_19, %c0_20], %34 {strides = array<i32>} : memref<1x16x16x128xf32, #tpu.memory_space<vmem>>, vector<1x16x16x128xf32>,
    return
  }
  func.func @transform_0(%arg0: i32, %arg1: i32) -> (i32, i32, i32, i32) {
    %c0_i32 = arith.constant 0 : i32
    %c0_i32_0 = arith.constant 0 : i32
    %c0_i32_1 = arith.constant 0 : i32
    return %arg1, %arg0, %c0_i32, %c0_i32_0 : i32, i32, i32, i32
  }
  func.func @transform_1(%arg0: i32, %arg1: i32) -> (i32, i32) {
    %c0_i32 = arith.constant 0 : i32
    %c0_i32_0 = arith.constant 0 : i32
    %c0_i32_1 = arith.constant 0 : i32
    return %c0_i32, %c0_i32_0 : i32, i32
  }
  func.func @transform_2(%arg0: i32, %arg1: i32) -> (i32, i32) {
    %c0_i32 = arith.constant 0 : i32
    %c0_i32_0 = arith.constant 0 : i32
    %c0_i32_1 = arith.constant 0 : i32
    return %c0_i32, %c0_i32_0 : i32, i32
  }
  func.func @transform_3(%arg0: i32, %arg1: i32) -> (i32, i32, i32) {
    %c0_i32 = arith.constant 0 : i32
    %c0_i32_0 = arith.constant 0 : i32
    %c0_i32_1 = arith.constant 0 : i32
    return %arg0, %c0_i32, %c0_i32_0 : i32, i32, i32
  }
  func.func @transform_4(%arg0: i32, %arg1: i32) -> (i32, i32, i32, i32) {
    %c0_i32 = arith.constant 0 : i32
    %c0_i32_0 = arith.constant 0 : i32
    %c0_i32_1 = arith.constant 0 : i32
    return %arg1, %arg0, %c0_i32, %c0_i32_0 : i32, i32, i32, i32
  }
  func.func @transform_5(%arg0: i32, %arg1: i32) -> (i32, i32, i32, i32) {
    %c0_i32 = arith.constant 0 : i32
    %c0_i32_0 = arith.constant 0 : i32
    %c0_i32_1 = arith.constant 0 : i32
    return %arg1, %arg0, %c0_i32, %c0_i32_0 : i32, i32, i32, i32
  }
}

module attributes {stable_mosaic.version = 11 : i64} {
  func.func @kernel(%arg0: i32, %arg1: i32, %arg2: memref<1x8x8x64xbf16, #tpu.memory_space<vmem>>, %arg3: memref<64x128xbf16, #tpu.memory_space<vmem>>, %arg4: memref<8x128xf32, #tpu.memory_space<vmem>>, %arg5: memref<8x8x128xf32, #tpu.memory_space<vmem>>, %arg6: memref<1x8x8x128xf32, #tpu.memory_space<vmem>>, %arg7: memref<1x8x8x128xf32, #tpu.memory_space<vmem>>) attributes {dimension_semantics = [#tpu.dimension_semantics<parallel>, #tpu.dimension_semantics<parallel>], iteration_bounds = array<i64: 1, 2>, scalar_prefetch = 0 : i64, scratch_operands = 0 : i64, tpu.core_type = #tpu.core_type<tc>, window_params = [{transform_indices = @transform_0, window_bounds = array<i64: 1, 8, 8, 64>}, {pipeline_mode = #tpu.pipeline_mode<synchronous>, transform_indices = @transform_1, window_bounds = array<i64: 64, 128>}, {pipeline_mode = #tpu.pipeline_mode<synchronous>, transform_indices = @transform_2, window_bounds = array<i64: 8, 128>}, {transform_indices = @transform_3, window_bounds = array<i64: 8, 8, 128>}, {transform_indices = @transform_4, window_bounds = array<i64: 1, 8, 8, 128>}, {transform_indices = @transform_5, window_bounds = array<i64: 1, 8, 8, 128>}]} {
    %c0 = arith.constant 0 : index
    %c0_0 = arith.constant 0 : index
    %c0_1 = arith.constant 0 : index
    %c0_2 = arith.constant 0 : index
    %0 = vector.load %arg2[%c0, %c0_0, %c0_1, %c0_2] : memref<1x8x8x64xbf16, #tpu.memory_space<vmem>>, vector<1x8x8x64xbf16>
    %1 = vector.shape_cast %0 : vector<1x8x8x64xbf16> to vector<8x8x64xbf16>
    %2 = vector.shape_cast %1 : vector<8x8x64xbf16> to vector<64x64xbf16>
    %c0_3 = arith.constant 0 : index
    %c0_4 = arith.constant 0 : index
    %3 = vector.load %arg3[%c0_3, %c0_4] : memref<64x128xbf16, #tpu.memory_space<vmem>>, vector<64x128xbf16>
    %cst = arith.constant dense<0.000000e+00> : vector<64x128xf32>
    %4 = tpu.matmul %2, %3, %cst {dimension_numbers = #tpu.dot_dimension_numbers<[1], [0], [0], [1], [0, 0, 1, 1], [], []>} : vector<64x64xbf16>, vector<64x128xbf16>, vector<64x128xf32> -> vector<64x128xf32>
    %c0_5 = arith.constant 0 : index
    %c0_6 = arith.constant 0 : index
    %5 = vector.load %arg4[%c0_5, %c0_6] : memref<8x128xf32, #tpu.memory_space<vmem>>, vector<1x128xf32>
    %6 = vector.shape_cast %5 : vector<1x128xf32> to vector<128xf32>
    %7 = vector.shape_cast %6 : vector<128xf32> to vector<1x128xf32>
    %8 = vector.broadcast %7 : vector<1x128xf32> to vector<64x128xf32>
    %9 = arith.addf %4, %8 : vector<64x128xf32>
    %10 = vector.shape_cast %9 : vector<64x128xf32> to vector<8x8x128xf32>
    %c0_7 = arith.constant 0 : index
    %c0_8 = arith.constant 0 : index
    %c0_9 = arith.constant 0 : index
    %c0_10 = arith.constant 0 : index
    %11 = vector.load %arg6[%c0_7, %c0_8, %c0_9, %c0_10] : memref<1x8x8x128xf32, #tpu.memory_space<vmem>>, vector<1x8x8x128xf32>
    %12 = vector.shape_cast %11 : vector<1x8x8x128xf32> to vector<8x8x128xf32>
    %13 = vector.shape_cast %10 : vector<8x8x128xf32> to vector<1x8x8x128xf32>
    tpu.vector_store %arg6[%c0_7, %c0_8, %c0_9, %c0_10], %13 {strides = array<i32>} : memref<1x8x8x128xf32, #tpu.memory_space<vmem>>, vector<1x8x8x128xf32>,
    %14 = arith.negf %10 : vector<8x8x128xf32>
    %15 = math.exp %14 : vector<8x8x128xf32>
    %cst_11 = arith.constant 1.000000e+00 : f32
    %16 = vector.broadcast %cst_11 : f32 to vector<8x8x128xf32>
    %17 = arith.addf %16, %15 : vector<8x8x128xf32>
    %18 = arith.divf %16, %17 : vector<8x8x128xf32>
    %c2 = arith.constant 2 : index
    %c0_12 = arith.constant 0 : index
    %19 = vector.load %arg4[%c2, %c0_12] : memref<8x128xf32, #tpu.memory_space<vmem>>, vector<1x128xf32>
    %20 = vector.shape_cast %19 : vector<1x128xf32> to vector<128xf32>
    %21 = vector.shape_cast %20 : vector<128xf32> to vector<1x1x128xf32>
    %22 = vector.broadcast %21 : vector<1x1x128xf32> to vector<8x8x128xf32>
    %23 = arith.mulf %22, %18 : vector<8x8x128xf32>
    %c1 = arith.constant 1 : index
    %c0_13 = arith.constant 0 : index
    %24 = vector.load %arg4[%c1, %c0_13] : memref<8x128xf32, #tpu.memory_space<vmem>>, vector<1x128xf32>
    %25 = vector.shape_cast %24 : vector<1x128xf32> to vector<128xf32>
    %26 = vector.shape_cast %25 : vector<128xf32> to vector<1x1x128xf32>
    %27 = vector.broadcast %26 : vector<1x1x128xf32> to vector<8x8x128xf32>
    %28 = arith.addf %23, %27 : vector<8x8x128xf32>
    %29 = arith.mulf %28, %18 : vector<8x8x128xf32>
    %c0_14 = arith.constant 0 : index
    %c0_15 = arith.constant 0 : index
    %c0_16 = arith.constant 0 : index
    %30 = vector.load %arg5[%c0_14, %c0_15, %c0_16] : memref<8x8x128xf32, #tpu.memory_space<vmem>>, vector<8x8x128xf32>
    %31 = arith.addf %29, %30 : vector<8x8x128xf32>
    %c0_17 = arith.constant 0 : index
    %c0_18 = arith.constant 0 : index
    %c0_19 = arith.constant 0 : index
    %c0_20 = arith.constant 0 : index
    %32 = vector.load %arg7[%c0_17, %c0_18, %c0_19, %c0_20] : memref<1x8x8x128xf32, #tpu.memory_space<vmem>>, vector<1x8x8x128xf32>
    %33 = vector.shape_cast %32 : vector<1x8x8x128xf32> to vector<8x8x128xf32>
    %34 = vector.shape_cast %31 : vector<8x8x128xf32> to vector<1x8x8x128xf32>
    tpu.vector_store %arg7[%c0_17, %c0_18, %c0_19, %c0_20], %34 {strides = array<i32>} : memref<1x8x8x128xf32, #tpu.memory_space<vmem>>, vector<1x8x8x128xf32>,
    return
  }
  func.func @transform_0(%arg0: i32, %arg1: i32) -> (i32, i32, i32, i32) {
    %c0_i32 = arith.constant 0 : i32
    %c0_i32_0 = arith.constant 0 : i32
    %c0_i32_1 = arith.constant 0 : i32
    return %arg1, %arg0, %c0_i32, %c0_i32_0 : i32, i32, i32, i32
  }
  func.func @transform_1(%arg0: i32, %arg1: i32) -> (i32, i32) {
    %c0_i32 = arith.constant 0 : i32
    %c0_i32_0 = arith.constant 0 : i32
    %c0_i32_1 = arith.constant 0 : i32
    return %c0_i32, %c0_i32_0 : i32, i32
  }
  func.func @transform_2(%arg0: i32, %arg1: i32) -> (i32, i32) {
    %c0_i32 = arith.constant 0 : i32
    %c0_i32_0 = arith.constant 0 : i32
    %c0_i32_1 = arith.constant 0 : i32
    return %c0_i32, %c0_i32_0 : i32, i32
  }
  func.func @transform_3(%arg0: i32, %arg1: i32) -> (i32, i32, i32) {
    %c0_i32 = arith.constant 0 : i32
    %c0_i32_0 = arith.constant 0 : i32
    %c0_i32_1 = arith.constant 0 : i32
    return %arg0, %c0_i32, %c0_i32_0 : i32, i32, i32
  }
  func.func @transform_4(%arg0: i32, %arg1: i32) -> (i32, i32, i32, i32) {
    %c0_i32 = arith.constant 0 : i32
    %c0_i32_0 = arith.constant 0 : i32
    %c0_i32_1 = arith.constant 0 : i32
    return %arg1, %arg0, %c0_i32, %c0_i32_0 : i32, i32, i32, i32
  }
  func.func @transform_5(%arg0: i32, %arg1: i32) -> (i32, i32, i32, i32) {
    %c0_i32 = arith.constant 0 : i32
    %c0_i32_0 = arith.constant 0 : i32
    %c0_i32_1 = arith.constant 0 : i32
    return %arg1, %arg0, %c0_i32, %c0_i32_0 : i32, i32, i32, i32
  }
}

module attributes {stable_mosaic.version = 11 : i64} {
  func.func @kernel(%arg0: i32, %arg1: i32, %arg2: memref<1x16x32x16xbf16, #tpu.memory_space<vmem>>, %arg3: memref<16x128xbf16, #tpu.memory_space<vmem>>, %arg4: memref<8x128xf32, #tpu.memory_space<vmem>>, %arg5: memref<16x32x128xf32, #tpu.memory_space<vmem>>, %arg6: memref<1x16x32x128xf32, #tpu.memory_space<vmem>>, %arg7: memref<1x16x32x128xf32, #tpu.memory_space<vmem>>) attributes {dimension_semantics = [#tpu.dimension_semantics<parallel>, #tpu.dimension_semantics<parallel>], iteration_bounds = array<i64: 2, 2>, scalar_prefetch = 0 : i64, scratch_operands = 0 : i64, tpu.core_type = #tpu.core_type<tc>, window_params = [{transform_indices = @transform_0, window_bounds = array<i64: 1, 16, 32, 16>}, {pipeline_mode = #tpu.pipeline_mode<synchronous>, transform_indices = @transform_1, window_bounds = array<i64: 16, 128>}, {pipeline_mode = #tpu.pipeline_mode<synchronous>, transform_indices = @transform_2, window_bounds = array<i64: 8, 128>}, {transform_indices = @transform_3, window_bounds = array<i64: 16, 32, 128>}, {transform_indices = @transform_4, window_bounds = array<i64: 1, 16, 32, 128>}, {transform_indices = @transform_5, window_bounds = array<i64: 1, 16, 32, 128>}]} {
    %c0 = arith.constant 0 : index
    %c0_0 = arith.constant 0 : index
    %c0_1 = arith.constant 0 : index
    %c0_2 = arith.constant 0 : index
    %0 = vector.load %arg2[%c0, %c0_0, %c0_1, %c0_2] : memref<1x16x32x16xbf16, #tpu.memory_space<vmem>>, vector<1x16x32x16xbf16>
    %1 = vector.shape_cast %0 : vector<1x16x32x16xbf16> to vector<16x32x16xbf16>
    %2 = vector.shape_cast %1 : vector<16x32x16xbf16> to vector<512x16xbf16>
    %c0_3 = arith.constant 0 : index
    %c0_4 = arith.constant 0 : index
    %3 = vector.load %arg3[%c0_3, %c0_4] : memref<16x128xbf16, #tpu.memory_space<vmem>>, vector<16x128xbf16>
    %cst = arith.constant dense<0.000000e+00> : vector<512x128xf32>
    %4 = tpu.matmul %2, %3, %cst {dimension_numbers = #tpu.dot_dimension_numbers<[1], [0], [0], [1], [0, 0, 1, 1], [], []>} : vector<512x16xbf16>, vector<16x128xbf16>, vector<512x128xf32> -> vector<512x128xf32>
    %c0_5 = arith.constant 0 : index
    %c0_6 = arith.constant 0 : index
    %5 = vector.load %arg4[%c0_5, %c0_6] : memref<8x128xf32, #tpu.memory_space<vmem>>, vector<1x128xf32>
    %6 = vector.shape_cast %5 : vector<1x128xf32> to vector<128xf32>
    %7 = vector.shape_cast %6 : vector<128xf32> to vector<1x128xf32>
    %8 = vector.broadcast %7 : vector<1x128xf32> to vector<512x128xf32>
    %9 = arith.addf %4, %8 : vector<512x128xf32>
    %10 = vector.shape_cast %9 : vector<512x128xf32> to vector<16x32x128xf32>
    %c0_7 = arith.constant 0 : index
    %c0_8 = arith.constant 0 : index
    %c0_9 = arith.constant 0 : index
    %c0_10 = arith.constant 0 : index
    %11 = vector.load %arg6[%c0_7, %c0_8, %c0_9, %c0_10] : memref<1x16x32x128xf32, #tpu.memory_space<vmem>>, vector<1x16x32x128xf32>
    %12 = vector.shape_cast %11 : vector<1x16x32x128xf32> to vector<16x32x128xf32>
    %13 = vector.shape_cast %10 : vector<16x32x128xf32> to vector<1x16x32x128xf32>
    tpu.vector_store %arg6[%c0_7, %c0_8, %c0_9, %c0_10], %13 {strides = array<i32>} : memref<1x16x32x128xf32, #tpu.memory_space<vmem>>, vector<1x16x32x128xf32>,
    %14 = arith.negf %10 : vector<16x32x128xf32>
    %15 = math.exp %14 : vector<16x32x128xf32>
    %cst_11 = arith.constant 1.000000e+00 : f32
    %16 = vector.broadcast %cst_11 : f32 to vector<16x32x128xf32>
    %17 = arith.addf %16, %15 : vector<16x32x128xf32>
    %18 = arith.divf %16, %17 : vector<16x32x128xf32>
    %c2 = arith.constant 2 : index
    %c0_12 = arith.constant 0 : index
    %19 = vector.load %arg4[%c2, %c0_12] : memref<8x128xf32, #tpu.memory_space<vmem>>, vector<1x128xf32>
    %20 = vector.shape_cast %19 : vector<1x128xf32> to vector<128xf32>
    %21 = vector.shape_cast %20 : vector<128xf32> to vector<1x1x128xf32>
    %22 = vector.broadcast %21 : vector<1x1x128xf32> to vector<16x32x128xf32>
    %23 = arith.mulf %22, %18 : vector<16x32x128xf32>
    %c1 = arith.constant 1 : index
    %c0_13 = arith.constant 0 : index
    %24 = vector.load %arg4[%c1, %c0_13] : memref<8x128xf32, #tpu.memory_space<vmem>>, vector<1x128xf32>
    %25 = vector.shape_cast %24 : vector<1x128xf32> to vector<128xf32>
    %26 = vector.shape_cast %25 : vector<128xf32> to vector<1x1x128xf32>
    %27 = vector.broadcast %26 : vector<1x1x128xf32> to vector<16x32x128xf32>
    %28 = arith.addf %23, %27 : vector<16x32x128xf32>
    %29 = arith.mulf %28, %18 : vector<16x32x128xf32>
    %c0_14 = arith.constant 0 : index
    %c0_15 = arith.constant 0 : index
    %c0_16 = arith.constant 0 : index
    %30 = vector.load %arg5[%c0_14, %c0_15, %c0_16] : memref<16x32x128xf32, #tpu.memory_space<vmem>>, vector<16x32x128xf32>
    %31 = arith.addf %29, %30 : vector<16x32x128xf32>
    %c0_17 = arith.constant 0 : index
    %c0_18 = arith.constant 0 : index
    %c0_19 = arith.constant 0 : index
    %c0_20 = arith.constant 0 : index
    %32 = vector.load %arg7[%c0_17, %c0_18, %c0_19, %c0_20] : memref<1x16x32x128xf32, #tpu.memory_space<vmem>>, vector<1x16x32x128xf32>
    %33 = vector.shape_cast %32 : vector<1x16x32x128xf32> to vector<16x32x128xf32>
    %34 = vector.shape_cast %31 : vector<16x32x128xf32> to vector<1x16x32x128xf32>
    tpu.vector_store %arg7[%c0_17, %c0_18, %c0_19, %c0_20], %34 {strides = array<i32>} : memref<1x16x32x128xf32, #tpu.memory_space<vmem>>, vector<1x16x32x128xf32>,
    return
  }
  func.func @transform_0(%arg0: i32, %arg1: i32) -> (i32, i32, i32, i32) {
    %c0_i32 = arith.constant 0 : i32
    %c0_i32_0 = arith.constant 0 : i32
    %c0_i32_1 = arith.constant 0 : i32
    return %arg1, %arg0, %c0_i32, %c0_i32_0 : i32, i32, i32, i32
  }
  func.func @transform_1(%arg0: i32, %arg1: i32) -> (i32, i32) {
    %c0_i32 = arith.constant 0 : i32
    %c0_i32_0 = arith.constant 0 : i32
    %c0_i32_1 = arith.constant 0 : i32
    return %c0_i32, %c0_i32_0 : i32, i32
  }
  func.func @transform_2(%arg0: i32, %arg1: i32) -> (i32, i32) {
    %c0_i32 = arith.constant 0 : i32
    %c0_i32_0 = arith.constant 0 : i32
    %c0_i32_1 = arith.constant 0 : i32
    return %c0_i32, %c0_i32_0 : i32, i32
  }
  func.func @transform_3(%arg0: i32, %arg1: i32) -> (i32, i32, i32) {
    %c0_i32 = arith.constant 0 : i32
    %c0_i32_0 = arith.constant 0 : i32
    %c0_i32_1 = arith.constant 0 : i32
    return %arg0, %c0_i32, %c0_i32_0 : i32, i32, i32
  }
  func.func @transform_4(%arg0: i32, %arg1: i32) -> (i32, i32, i32, i32) {
    %c0_i32 = arith.constant 0 : i32
    %c0_i32_0 = arith.constant 0 : i32
    %c0_i32_1 = arith.constant 0 : i32
    return %arg1, %arg0, %c0_i32, %c0_i32_0 : i32, i32, i32, i32
  }
  func.func @transform_5(%arg0: i32, %arg1: i32) -> (i32, i32, i32, i32) {
    %c0_i32 = arith.constant 0 : i32
    %c0_i32_0 = arith.constant 0 : i32
    %c0_i32_1 = arith.constant 0 : i32
    return %arg1, %arg0, %c0_i32, %c0_i32_0 : i32, i32, i32, i32
  }
}

</mosaic_0001>

<bundles_post_ra>
// kernel: idetect_forward_pallas.4
= control target key start
LH: loop header
LB: loop body
LE: loop exit
PB: predicated region body
PF: predicated region fallthrough
CT: control target
= control target key end

     0   :  { %s1625_s18 = smov 0   ;;  %s1627_s19 = smov 0   ;;  %s2069_s0 = inlined_call_operand.vmem [shape: bf16[2,16,16,32], index: 0, kind: input, shape index: {}]   ;;  %s2070_s1 = inlined_call_operand.vmem [shape: bf16[32,128], index: 1, kind: input, shape index: {}]   ;;  %s2071_s2 = inlined_call_operand.vmem [shape: f32[8,128], index: 2, kind: input, shape index: {}]   ;;  %s2072_s3 = inlined_call_operand.vmem [shape: f32[16,16,128], index: 3, kind: input, shape index: {}]   ;;  %s2073_s4 = inlined_call_operand.vmem [shape: f32[2,16,16,128], index: 4, kind: output, shape index: {0}]   ;;  %s2074_s5 = inlined_call_operand.vmem [shape: f32[2,16,16,128], index: 5, kind: output, shape index: {1}]  }
   0x1   :  { %s1629_s20 = smov 0  }
   0x2 LB: > { %s25_s21 = sadd.s32 1, %s1589_s19  ;;  %p1262_p0 = scmp.ge.s32.totalorder %s1593_s20, 1  ;;  %s1593_s20 = sphi %s1629_s20, %s16_s20   ;;  %s1589_s19 = sphi %s1627_s19, %s2076_s19   ;;  %s1585_s18 = sphi %s1625_s18, %s2075_s18  }
   0x3   : > { %p26_p1 = scmp.ge.s32.totalorder %s25_s21, 2  ;;  %p226_p2 = scmp.lt.s32.totalorder %s1593_s20, 3 }
   0x5   : > { %s2078_s21 = smov (%p26_p1, %s25_s21), 0  ;;  %p227_p3 = pnand %p1262_p0, %p226_p2 }
   0x6   : > { %v1425_v0 = vld [vmem:[%s2070_s1] sm:$0xff] (!%p227_p3)   ;;  %p281_p4 = scmp.lt.s32.totalorder (!%p227_p3), %s1585_s18, 1  ;;  %v1426_v1 = vld [vmem:[%s2070_s1 + $0x8] sm:$0xff] (!%p227_p3)   ;;  %vm454_vm0 = vcmask (!%p227_p3), 261120  }
   0x7   : > { %230 = sbr.rel (%p227_p3) target bundleno = 340 (0x154), region = 36  ;;  %1361 = vmatprep.subr.bf16.mxu0 (!%p227_p3), %v1425_v0  ;;  %1397 = vmatprep.subr.bf16.mxu1 (!%p227_p3), %v1425_v0  ;;  %v1693_v18 = vld [vmem:[%s2071_s2] ss:$0 sm:$0xff] (!%p227_p3) }
   0x8   : > { %1362 = vmatpush3.bf16.msra.mxu0 (!%p227_p3), %v1425_v0  ;;  %1399 = vmatpush3.bf16.msra.mxu1 (!%p227_p3), %v1425_v0 }
   0x9   : > { %1363 = vmatprep.subr.bf16.mxu0 (!%p227_p3), %v1426_v1  ;;  %1398 = vmatprep.subr.bf16.mxu1 (!%p227_p3), %v1426_v1 }
   0xc   : > { %1364 = vmatpush3.bf16.msra.mxu0 (!%p227_p3), %v1426_v1  ;;  %1400 = vmatpush3.bf16.msra.mxu1 (!%p227_p3), %v1426_v1 }
   0xe   : > { %s2080_s18 = smov (!%p281_p4, %s1585_s18), 1 }
   0xf   : > { %s1340_s26 = sshll.u32 %s2080_s18, 7  ;;  %s1341_s30 = sshll.u32 %s2080_s18, 8 }
  0x10   : > { %s1655_s29 = scalar_lea.vmem %s2069_s0, %s1340_s26  ;;  %s1700_s10 = scalar_lea.vmem %s2073_s4, %s1341_s30 }
  0x11   : > { %v1427_v2 = vld [vmem:[%s1655_s29] sm:$0xff]   ;;  %v1429_v4 = vld [vmem:[%s1655_s29 + $0x8] sm:$0xff]   ;;  %v1431_v6 = vld [vmem:[%s1655_s29 + $0x10] sm:$0xff]   ;;  %s1859_s25 = scalar_lea.vmem %s2074_s5, %s1341_s30 }
  0x12   : > { %v1428_v3 = vld [vmem:[%s1655_s29 + $0x40] sm:$0xff]   ;;  %1365 = vmatprep.mubr.msk.bf16.mxu0 %vm454_vm0, %v1427_v2  ;;  %v1430_v5 = vld [vmem:[%s1655_s29 + $0x48] sm:$0xff]   ;;  %v1432_v7 = vld [vmem:[%s1655_s29 + $0x50] sm:$0xff]  }
  0x13   : > { %1381 = vmatprep.mubr.msk.bf16.mxu1 %vm454_vm0, %v1428_v3  ;;  %1366 = vmatmul.mubr.msk.bf16.vlgmr.msra.gmra.mrb[0].mxu0 %vm454_vm0, %v1429_v4  ;;  %v1433_v8 = vld [vmem:[%s1655_s29 + $0x18] sm:$0xff]   ;;  %v1435_v10 = vld [vmem:[%s1655_s29 + $0x20] sm:$0xff]   ;;  %v1437_v12 = vld [vmem:[%s1655_s29 + $0x28] sm:$0xff]  }
  0x14   : > { %1382 = vmatmul.mubr.msk.bf16.vlgmr.msra.gmra.mrb[0].mxu1 %vm454_vm0, %v1430_v5  ;;  %1369 = vmatprep.mubr.msk.bf16.mxu0 %vm454_vm0, %v1431_v6  ;;  %v1434_v9 = vld [vmem:[%s1655_s29 + $0x58] sm:$0xff]   ;;  %v1436_v11 = vld [vmem:[%s1655_s29 + $0x60] sm:$0xff]   ;;  %v1438_v13 = vld [vmem:[%s1655_s29 + $0x68] sm:$0xff]  }
  0x15   : > { %1385 = vmatprep.mubr.msk.bf16.mxu1 %vm454_vm0, %v1432_v7  ;;  %v1439_v14 = vld [vmem:[%s1655_s29 + $0x30] sm:$0xff]   ;;  %v1441_v16 = vld [vmem:[%s1655_s29 + $0x38] sm:$0xff]  }
  0x16   : > { %v1440_v15 = vld [vmem:[%s1655_s29 + $0x70] sm:$0xff]   ;;  %v1442_v17 = vld [vmem:[%s1655_s29 + $0x78] sm:$0xff]  }
  0x1b   : > { %1370 = vmatmul.mubr.msk.bf16.gmra.mrb[4].mxu0 %vm454_vm0, %v1433_v8 }
  0x1c   : > { %1386 = vmatmul.mubr.msk.bf16.gmra.mrb[4].mxu1 %vm454_vm0, %v1434_v9  ;;  %1373 = vmatprep.mubr.msk.bf16.mxu0 %vm454_vm0, %v1435_v10 }
  0x1d   : > { %1389 = vmatprep.mubr.msk.bf16.mxu1 %vm454_vm0, %v1436_v11 }
  0x23   : > { %1374 = vmatmul.mubr.msk.bf16.gmra.mrb[8].mxu0 %vm454_vm0, %v1437_v12 }
  0x24   : > { %1390 = vmatmul.mubr.msk.bf16.gmra.mrb[8].mxu1 %vm454_vm0, %v1438_v13  ;;  %1377 = vmatprep.mubr.msk.bf16.mxu0 %vm454_vm0, %v1439_v14 }
  0x25   : > { %1393 = vmatprep.mubr.msk.bf16.mxu1 %vm454_vm0, %v1440_v15 }
  0x2b   : > { %1378 = vmatmul.mubr.msk.bf16.gmra.mrb[12].mxu0 %vm454_vm0, %v1441_v16 }
  0x2c   : > { %1394 = vmatmul.mubr.msk.bf16.gmra.mrb[12].mxu1 %vm454_vm0, %v1442_v17 }
  0xe6   : > { %v1367_v19 = vpop.f32.mrb[0].mxu0 }
  0xe7   : > { %v546_v20 = vadd.f32 %v1367_v19, %v1693_v18  ;;  %v1383_v21 = vpop.f32.mrb[0].mxu1  ;;  %v537_v22 = vpop.f32.mrb[1].mxu0 }
  0xe8   : > { %v610_v23 = vadd.f32 %v1383_v21, %v1693_v18  ;;  %v538_v24 = vadd.f32 %v1693_v18, %v537_v22  ;;  %v601_v25 = vpop.f32.mrb[1].mxu1  ;;  %v1368_v26 = vpop.f32.mrb[2].mxu0 }
  0xe9   : > { %666 = vst [vmem:[%s1700_s10 + $0x10] sm:$0xff] %v546_v20  ;;  %v1306_v27 = vmul.f32 -1.442695, %v546_v20  ;;  %v602_v28 = vadd.f32 %v1693_v18, %v601_v25  ;;  %v549_v29 = vadd.f32 %v1368_v26, %v1693_v18  ;;  %v1384_v30 = vpop.f32.mrb[2].mxu1  ;;  %v540_v31 = vpop.f32.mrb[3].mxu0 }
  0xea   : > { %682 = vst [vmem:[%s1700_s10 + $0x90] sm:$0xff] %v610_v23  ;;  %v1322_v32 = vmul.f32 -1.442695, %v610_v23  ;;  %664 = vst [vmem:[%s1700_s10] sm:$0xff] %v538_v24  ;;  %v1304_v33 = vmul.f32 -1.442695, %v538_v24  ;;  %v613_v34 = vadd.f32 %v1384_v30, %v1693_v18  ;;  %v541_v35 = vadd.f32 %v1693_v18, %v540_v31  ;;  %v604_v36 = vpop.f32.mrb[3].mxu1 }
  0xeb   : > { %1443 = vpow2.f32 %v1306_v27  ;;  %680 = vst [vmem:[%s1700_s10 + $0x80] sm:$0xff] %v602_v28  ;;  %v1320_v37 = vmul.f32 -1.442695, %v602_v28  ;;  %667 = vst [vmem:[%s1700_s10 + $0x18] sm:$0xff] %v549_v29  ;;  %v1307_v38 = vmul.f32 -1.442695, %v549_v29  ;;  %v605_v39 = vadd.f32 %v1693_v18, %v604_v36 }
  0xec   : > { %1445 = vpow2.f32 %v1322_v32  ;;  %683 = vst [vmem:[%s1700_s10 + $0x98] sm:$0xff] %v613_v34  ;;  %v1323_v40 = vmul.f32 -1.442695, %v613_v34  ;;  %665 = vst [vmem:[%s1700_s10 + $0x8] sm:$0xff] %v541_v35  ;;  %v1305_v41 = vmul.f32 -1.442695, %v541_v35 }
  0xed   : > { %1447 = vpow2.f32 %v1304_v33  ;;  %681 = vst [vmem:[%s1700_s10 + $0x88] sm:$0xff] %v605_v39  ;;  %v1321_v42 = vmul.f32 -1.442695, %v605_v39 }
  0xee   : > { %1449 = vpow2.f32 %v1320_v37  ;;  %v1371_v43 = vpop.f32.mrb[4].mxu0 }
  0xef   : > { %1451 = vpow2.f32 %v1307_v38  ;;  %v562_v44 = vadd.f32 %v1371_v43, %v1693_v18  ;;  %v1387_v45 = vpop.f32.mrb[4].mxu1  ;;  %v553_v46 = vpop.f32.mrb[5].mxu0  ;;  %v1784_v38 = vld [vmem:[%s2071_s2 + $0x2] ss:$0 sm:$0xff] }
  0xf0   : > { %1453 = vpow2.f32 %v1323_v40  ;;  %v626_v47 = vadd.f32 %v1387_v45, %v1693_v18  ;;  %v554_v48 = vadd.f32 %v1693_v18, %v553_v46  ;;  %v617_v49 = vpop.f32.mrb[5].mxu1  ;;  %v1372_v50 = vpop.f32.mrb[6].mxu0 }
  0xf1   : > { %1455 = vpow2.f32 %v1305_v41  ;;  %670 = vst [vmem:[%s1700_s10 + $0x30] sm:$0xff] %v562_v44  ;;  %v1310_v51 = vmul.f32 -1.442695, %v562_v44  ;;  %v618_v52 = vadd.f32 %v1693_v18, %v617_v49  ;;  %v565_v53 = vadd.f32 %v1372_v50, %v1693_v18  ;;  %v1388_v54 = vpop.f32.mrb[6].mxu1  ;;  %v556_v55 = vpop.f32.mrb[7].mxu0 }
  0xf2   : > { %1457 = vpow2.f32 %v1321_v42  ;;  %686 = vst [vmem:[%s1700_s10 + $0xb0] sm:$0xff] %v626_v47  ;;  %v1326_v56 = vmul.f32 -1.442695, %v626_v47  ;;  %668 = vst [vmem:[%s1700_s10 + $0x20] sm:$0xff] %v554_v48  ;;  %v1308_v57 = vmul.f32 -1.442695, %v554_v48  ;;  %v1727_v58 = vadd.f32 %v1388_v54, %v1693_v18 }
  0xf3   : > { %v620_v59 = vpop.f32.mrb[7].mxu1  ;;  %1459 = vpow2.f32 %v1310_v51  ;;  %684 = vst [vmem:[%s1700_s10 + $0xa0] sm:$0xff] %v618_v52  ;;  %v1324_v60 = vmul.f32 -1.442695, %v618_v52  ;;  %671 = vst [vmem:[%s1700_s10 + $0x38] sm:$0xff] %v565_v53  ;;  %v1732_v62 = vadd.f32 %v1693_v18, %v556_v55 }
  0xf4   : > { %v1311_v61 = vmul.f32 -1.442695, %v565_v53  ;;  %1461 = vpow2.f32 %v1326_v56  ;;  %687 = vst [vmem:[%s1700_s10 + $0xb8] sm:$0xff] %v1727_v58  ;;  %v1737_v63 = vadd.f32 %v1693_v18, %v620_v59  ;;  %v1794_v44 = vld [vmem:[%s2071_s2 + $0x1] ss:$0 sm:$0xff] }
  0xf5   : > { %v1444_v0 = vpop.eup %1443  ;;  %1463 = vpow2.f32 %v1308_v57  ;;  %669 = vst [vmem:[%s1700_s10 + $0x28] sm:$0xff] %v1732_v62  ;;  %v1327_v52 = vmul.f32 -1.442695, %v1727_v58  ;;  %v1309_v59 = vmul.f32 -1.442695, %v1732_v62 }
  0xf6   : > { %v1446_v1 = vpop.eup %1445  ;;  %v794_v2 = vadd.f32 1.0, %v1444_v0  ;;  %1465 = vpow2.f32 %v1324_v60  ;;  %685 = vst [vmem:[%s1700_s10 + $0xa8] sm:$0xff] %v1737_v63  ;;  %v1375_v3 = vpop.f32.mrb[8].mxu0  ;;  %v1325_v60 = vmul.f32 -1.442695, %v1737_v63 }
  0xf7   : > { %v1448_v4 = vpop.eup %1447  ;;  %v810_v5 = vadd.f32 1.0, %v1446_v1  ;;  %1467 = vpow2.f32 %v1311_v61  ;;  %v1744_v6 = vadd.f32 %v1375_v3, %v1693_v18  ;;  %v1391_v7 = vpop.f32.mrb[8].mxu1 }
  0xf8   : > { %v569_v8 = vpop.f32.mrb[9].mxu0  ;;  %v1450_v9 = vpop.eup %1449  ;;  %1469 = vrcp.f32 %v794_v2  ;;  %v792_v10 = vadd.f32 1.0, %v1448_v4  ;;  %v1747_v11 = vadd.f32 %v1391_v7, %v1693_v18 }
  0xf9   : > { %v1750_v12 = vadd.f32 %v1693_v18, %v569_v8  ;;  %v633_v13 = vpop.f32.mrb[9].mxu1  ;;  %v1376_v14 = vpop.f32.mrb[10].mxu0  ;;  %1471 = vrcp.f32 %v810_v5  ;;  %v808_v16 = vadd.f32 1.0, %v1450_v9  ;;  %674 = vst [vmem:[%s1700_s10 + $0x50] sm:$0xff] %v1744_v6  ;;  %v1314_v1 = vmul.f32 -1.442695, %v1744_v6 }
  0xfa   : > { %v1452_v15 = vpop.eup %1451  ;;  %v1755_v17 = vadd.f32 %v1693_v18, %v633_v13  ;;  %v1392_v19 = vpop.f32.mrb[10].mxu1  ;;  %1473 = vrcp.f32 %v792_v10  ;;  %690 = vst [vmem:[%s1700_s10 + $0xd0] sm:$0xff] %v1747_v11  ;;  %v1764_v26 = vadd.f32 %v1376_v14, %v1693_v18  ;;  %v1833_v8 = vmul.f32 -1.442695, %v1747_v11  ;;  %v996_v10 = vld [vmem:[%s2072_s3 + $0x10] sm:$0xff] }
  0xfb   : > { %v572_v20 = vpop.f32.mrb[11].mxu0  ;;  %v1454_v21 = vpop.eup %1453  ;;  %v795_v22 = vadd.f32 1.0, %v1452_v15  ;;  %672 = vst [vmem:[%s1700_s10 + $0x40] sm:$0xff] %v1750_v12  ;;  %1475 = vrcp.f32 %v808_v16  ;;  %v1767_v29 = vadd.f32 %v1392_v19, %v1693_v18  ;;  %v1843_v15 = vmul.f32 -1.442695, %v1750_v12  ;;  %v1012_v19 = vld [vmem:[%s2072_s3 + $0x90] sm:$0xff] }
  0xfc   : > { %v636_v23 = vpop.f32.mrb[11].mxu1  ;;  %v1456_v24 = vpop.eup %1455  ;;  %v811_v25 = vadd.f32 1.0, %v1454_v21  ;;  %688 = vst [vmem:[%s1700_s10 + $0xc0] sm:$0xff] %v1755_v17  ;;  %v1770_v30 = vadd.f32 %v1693_v18, %v572_v20  ;;  %675 = vst [vmem:[%s1700_s10 + $0x58] sm:$0xff] %v1764_v26 }
  0xfd   : > { %v1458_v27 = vpop.eup %1457  ;;  %1477 = vrcp.f32 %v795_v22  ;;  %v793_v28 = vadd.f32 1.0, %v1456_v24  ;;  %v1775_v33 = vadd.f32 %v1693_v18, %v636_v23  ;;  %691 = vst [vmem:[%s1700_s10 + $0xd8] sm:$0xff] %v1767_v29  ;;  %v994_v23 = vld [vmem:[%s2072_s3] sm:$0xff] }
  0xfe   : > { %v1460_v31 = vpop.eup %1459  ;;  %1479 = vrcp.f32 %v811_v25  ;;  %v809_v32 = vadd.f32 1.0, %v1458_v27  ;;  %673 = vst [vmem:[%s1700_s10 + $0x48] sm:$0xff] %v1770_v30  ;;  %v1379_v36 = vpop.f32.mrb[12].mxu0 }
  0xff   : > { %v1462_v34 = vpop.eup %1461  ;;  %1481 = vrcp.f32 %v793_v28  ;;  %v798_v35 = vadd.f32 1.0, %v1460_v31  ;;  %689 = vst [vmem:[%s1700_s10 + $0xc8] sm:$0xff] %v1775_v33  ;;  %v1789_v40 = vadd.f32 %v1379_v36, %v1693_v18  ;;  %v1395_v41 = vpop.f32.mrb[12].mxu1 }
 0x100   : > { %v1464_v37 = vpop.eup %1463  ;;  %1483 = vrcp.f32 %v809_v32  ;;  %v814_v39 = vadd.f32 1.0, %v1462_v34  ;;  %v585_v42 = vpop.f32.mrb[13].mxu0  ;;  %v1797_v46 = vadd.f32 %v1395_v41, %v1693_v18  ;;  %v1010_v32 = vld [vmem:[%s2072_s3 + $0x80] sm:$0xff]  ;;  %v997_v41 = vld [vmem:[%s2072_s3 + $0x18] sm:$0xff] }
 0x101   : > { %v1466_v43 = vpop.eup %1465  ;;  %1485 = vrcp.f32 %v798_v35  ;;  %v796_v45 = vadd.f32 1.0, %v1464_v37  ;;  %v1800_v47 = vadd.f32 %v1693_v18, %v585_v42  ;;  %v649_v48 = vpop.f32.mrb[13].mxu1  ;;  %678 = vst [vmem:[%s1700_s10 + $0x70] sm:$0xff] %v1789_v40 }
 0x102   : > { %v1380_v49 = vpop.f32.mrb[14].mxu0  ;;  %v1468_v50 = vpop.eup %1467  ;;  %1487 = vrcp.f32 %v814_v39  ;;  %v812_v51 = vadd.f32 1.0, %v1466_v43  ;;  %v1806_v53 = vadd.f32 %v1693_v18, %v649_v48  ;;  %694 = vst [vmem:[%s1700_s10 + $0xf0] sm:$0xff] %v1797_v46 }
 0x103   : > { %v1396_v54 = vpop.f32.mrb[14].mxu1  ;;  %v588_v55 = vpop.f32.mrb[15].mxu0  ;;  %1489 = vrcp.f32 %v796_v45  ;;  %v799_v57 = vadd.f32 1.0, %v1468_v50  ;;  %676 = vst [vmem:[%s1700_s10 + $0x60] sm:$0xff] %v1800_v47  ;;  %v1821_v2 = vadd.f32 %v1380_v49, %v1693_v18  ;;  %v1013_v50 = vld [vmem:[%s2072_s3 + $0x98] sm:$0xff] }
 0x104   : > { %v1470_v56 = vpop.eup %1469  ;;  %v1814_v58 = vpop.f32.mrb[15].mxu1  ;;  %1491 = vrcp.f32 %v812_v51  ;;  %692 = vst [vmem:[%s1700_s10 + $0xe0] sm:$0xff] %v1806_v53  ;;  %v1825_v3 = vadd.f32 %v1396_v54, %v1693_v18  ;;  %v1828_v4 = vadd.f32 %v1693_v18, %v588_v55 }
 0x105   : > { %v1472_v61 = vpop.eup %1471  ;;  %v895_v0 = vmul.f32 %v1470_v56, %v1784_v38  ;;  %1493 = vrcp.f32 %v799_v57  ;;  %679 = vst [vmem:[%s1700_s10 + $0x78] sm:$0xff] %v1821_v2  ;;  %v995_v57 = vld [vmem:[%s2072_s3 + $0x8] sm:$0xff] }
 0x106   : > { %v1474_v62 = vpop.eup %1473  ;;  %v911_v63 = vmul.f32 %v1472_v61, %v1784_v38  ;;  %1495 = vpow2.f32 %v1327_v52  ;;  %695 = vst [vmem:[%s1700_s10 + $0xf8] sm:$0xff] %v1825_v3  ;;  %677 = vst [vmem:[%s1700_s10 + $0x68] sm:$0xff] %v1828_v4 }
 0x107   : > { %v1476_v5 = vpop.eup %1475  ;;  %v932_v6 = vadd.f32 %v1794_v44, %v895_v0  ;;  %v893_v7 = vmul.f32 %v1474_v62, %v1784_v38  ;;  %1497 = vpow2.f32 %v1309_v59 }
 0x108   : > { %v1478_v9 = vpop.eup %1477  ;;  %v948_v13 = vadd.f32 %v1794_v44, %v911_v63  ;;  %v909_v14 = vmul.f32 %v1476_v5, %v1784_v38  ;;  %1499 = vpow2.f32 %v1325_v60 }
 0x109   : > { %v1480_v11 = vpop.eup %1479  ;;  %v964_v16 = vmul.f32 %v1470_v56, %v932_v6  ;;  %v930_v20 = vadd.f32 %v1794_v44, %v893_v7  ;;  %v896_v21 = vmul.f32 %v1478_v9, %v1784_v38  ;;  %1501 = vpow2.f32 %v1314_v1 }
 0x10a   : > { %v1482_v22 = vpop.eup %1481  ;;  %v980_v12 = vmul.f32 %v1472_v61, %v948_v13  ;;  %v946_v24 = vadd.f32 %v1794_v44, %v909_v14  ;;  %v912_v25 = vmul.f32 %v1480_v11, %v1784_v38 }
 0x10b   : > { %v1484_v27 = vpop.eup %1483  ;;  %v1028_v28 = vadd.f32 %v996_v10, %v964_v16  ;;  %v962_v31 = vmul.f32 %v1474_v62, %v930_v20  ;;  %v933_v34 = vadd.f32 %v1794_v44, %v896_v21  ;;  %v894_v35 = vmul.f32 %v1482_v22, %v1784_v38  ;;  %v1011_v62 = vld [vmem:[%s2072_s3 + $0x88] sm:$0xff]  ;;  %v1000_v10 = vld [vmem:[%s2072_s3 + $0x30] sm:$0xff] }
 0x10c   : > { %v1486_v36 = vpop.eup %1485  ;;  %v1044_v37 = vadd.f32 %v1012_v19, %v980_v12  ;;  %v978_v39 = vmul.f32 %v1476_v5, %v946_v24  ;;  %v949_v42 = vadd.f32 %v1794_v44, %v912_v25  ;;  %v910_v43 = vmul.f32 %v1484_v27, %v1784_v38  ;;  %v1016_v20 = vld [vmem:[%s2072_s3 + $0xb0] sm:$0xff]  ;;  %v998_v25 = vld [vmem:[%s2072_s3 + $0x20] sm:$0xff] }
 0x10d   : > { %v1488_v45 = vpop.eup %1487  ;;  %1060 = vst [vmem:[%s1859_s25 + $0x10] sm:$0xff] %v1028_v28  ;;  %v1026_v48 = vadd.f32 %v994_v23, %v962_v31  ;;  %v965_v49 = vmul.f32 %v1478_v9, %v933_v34  ;;  %v931_v51 = vadd.f32 %v1794_v44, %v894_v35  ;;  %v899_v52 = vmul.f32 %v1486_v36, %v1784_v38  ;;  %v1014_v35 = vld [vmem:[%s2072_s3 + $0xa0] sm:$0xff] }
 0x10e   : > { %v1490_v54 = vpop.eup %1489  ;;  %1076 = vst [vmem:[%s1859_s25 + $0x90] sm:$0xff] %v1044_v37  ;;  %v1042_v55 = vadd.f32 %v1010_v32, %v978_v39  ;;  %v981_v56 = vmul.f32 %v1480_v11, %v949_v42  ;;  %v947_v59 = vadd.f32 %v1794_v44, %v910_v43  ;;  %v915_v60 = vmul.f32 %v1488_v45, %v1784_v38  ;;  %v1001_v43 = vld [vmem:[%s2072_s3 + $0x38] sm:$0xff] }
 0x10f   : > { %v1492_v61 = vpop.eup %1491  ;;  %1058 = vst [vmem:[%s1859_s25] sm:$0xff] %v1026_v48  ;;  %v1029_v0 = vadd.f32 %v997_v41, %v965_v49  ;;  %v963_v1 = vmul.f32 %v1482_v22, %v931_v51  ;;  %v936_v63 = vadd.f32 %v1794_v44, %v899_v52  ;;  %v897_v5 = vmul.f32 %v1490_v54, %v1784_v38 }
 0x110   : > { %v1494_v6 = vpop.eup %1493  ;;  %1074 = vst [vmem:[%s1859_s25 + $0x80] sm:$0xff] %v1042_v55  ;;  %v1045_v7 = vadd.f32 %v1013_v50, %v981_v56  ;;  %v979_v9 = vmul.f32 %v1484_v27, %v947_v59  ;;  %v952_v13 = vadd.f32 %v1794_v44, %v915_v60  ;;  %v913_v14 = vmul.f32 %v1492_v61, %v1784_v38 }
 0x111   : > { %v1496_v11 = vpop.eup %1495  ;;  %1061 = vst [vmem:[%s1859_s25 + $0x18] sm:$0xff] %v1029_v0  ;;  %v1027_v16 = vadd.f32 %v995_v57, %v963_v1  ;;  %v968_v19 = vmul.f32 %v1486_v36, %v936_v63  ;;  %v934_v21 = vadd.f32 %v1794_v44, %v897_v5  ;;  %v900_v22 = vmul.f32 %v1494_v6, %v1784_v38 }
 0x112   : > { %v1498_v12 = vpop.eup %1497  ;;  %1077 = vst [vmem:[%s1859_s25 + $0x98] sm:$0xff] %v1045_v7  ;;  %v1043_v23 = vadd.f32 %v1011_v62, %v979_v9  ;;  %v984_v24 = vmul.f32 %v1488_v45, %v952_v13  ;;  %v950_v27 = vadd.f32 %v1794_v44, %v913_v14  ;;  %v815_v28 = vadd.f32 1.0, %v1496_v11  ;;  %v1015_v13 = vld [vmem:[%s2072_s3 + $0xa8] sm:$0xff] }
 0x113   : > { %v1500_v31 = vpop.eup %1499  ;;  %1059 = vst [vmem:[%s1859_s25 + $0x8] sm:$0xff] %v1027_v16  ;;  %v1032_v32 = vadd.f32 %v1000_v10, %v968_v19  ;;  %v966_v34 = vmul.f32 %v1490_v54, %v934_v21  ;;  %v937_v36 = vadd.f32 %v1794_v44, %v900_v22  ;;  %v797_v37 = vadd.f32 1.0, %v1498_v12  ;;  %v1004_v21 = vld [vmem:[%s2072_s3 + $0x50] sm:$0xff] }
 0x114   : > { %v1502_v39 = vpop.eup %1501  ;;  %1075 = vst [vmem:[%s1859_s25 + $0x88] sm:$0xff] %v1043_v23  ;;  %v1048_v41 = vadd.f32 %v1016_v20, %v984_v24  ;;  %v982_v42 = vmul.f32 %v1492_v61, %v950_v27  ;;  %1503 = vrcp.f32 %v815_v28  ;;  %v813_v45 = vadd.f32 1.0, %v1500_v31 }
 0x115   : > { %1064 = vst [vmem:[%s1859_s25 + $0x30] sm:$0xff] %v1032_v32  ;;  %v1030_v48 = vadd.f32 %v998_v25, %v966_v34  ;;  %v969_v49 = vmul.f32 %v1494_v6, %v937_v36  ;;  %1505 = vrcp.f32 %v797_v37  ;;  %v802_v50 = vadd.f32 1.0, %v1502_v39 }
 0x116   : > { %1080 = vst [vmem:[%s1859_s25 + $0xb0] sm:$0xff] %v1048_v41  ;;  %v1046_v51 = vadd.f32 %v1014_v35, %v982_v42  ;;  %1507 = vrcp.f32 %v813_v45  ;;  %v1328_v52 = vmul.f32 -1.442695, %v1755_v17  ;;  %v1925_v54 = vadd.f32 %v1693_v18, %v1814_v58 }
 0x117   : > { %1062 = vst [vmem:[%s1859_s25 + $0x20] sm:$0xff] %v1030_v48  ;;  %v1033_v55 = vadd.f32 %v1001_v43, %v969_v49  ;;  %1509 = vrcp.f32 %v802_v50  ;;  %v1315_v56 = vmul.f32 -1.442695, %v1764_v26  ;;  %v1331_v57 = vmul.f32 -1.442695, %v1767_v29 }
 0x118   : > { %1078 = vst [vmem:[%s1859_s25 + $0xa0] sm:$0xff] %v1046_v51  ;;  %1511 = vpow2.f32 %v1833_v8  ;;  %693 = vst [vmem:[%s1700_s10 + $0xe8] sm:$0xff] %v1925_v54  ;;  %v1313_v17 = vmul.f32 -1.442695, %v1770_v30  ;;  %v1329_v18 = vmul.f32 -1.442695, %v1775_v33 }
 0x119   : > { %1065 = vst [vmem:[%s1859_s25 + $0x38] sm:$0xff] %v1033_v55  ;;  %1513 = vpow2.f32 %v1843_v15  ;;  %v1318_v58 = vmul.f32 -1.442695, %v1789_v40  ;;  %v1334_v26 = vmul.f32 -1.442695, %v1797_v46 }
 0x11a   : > { %1515 = vpow2.f32 %v1328_v52  ;;  %v1316_v8 = vmul.f32 -1.442695, %v1800_v47  ;;  %v1332_v59 = vmul.f32 -1.442695, %v1806_v53  ;;  %v1319_v30 = vmul.f32 -1.442695, %v1821_v2 }
 0x11b   : > { %1517 = vpow2.f32 %v1315_v56  ;;  %v1335_v40 = vmul.f32 -1.442695, %v1825_v3  ;;  %v1017_v53 = vld [vmem:[%s2072_s3 + $0xb8] sm:$0xff]  ;;  %v999_v3 = vld [vmem:[%s2072_s3 + $0x28] sm:$0xff]  ;;  %v1317_v55 = vmul.f32 -1.442695, %v1828_v4 }
 0x11c   : > { %1519 = vpow2.f32 %v1331_v57 }
 0x11d   : > { %1521 = vpow2.f32 %v1313_v17  ;;  %v1333_v17 = vmul.f32 -1.442695, %v1925_v54 }
 0x11e   : > { %v1504_v29 = vpop.eup %1503  ;;  %1523 = vpow2.f32 %v1329_v18 }
 0x11f   : > { %v1506_v60 = vpop.eup %1505  ;;  %v916_v15 = vmul.f32 %v1504_v29, %v1784_v38  ;;  %1525 = vpow2.f32 %v1318_v58 }
 0x120   : > { %v1508_v33 = vpop.eup %1507  ;;  %v898_v61 = vmul.f32 %v1506_v60, %v1784_v38  ;;  %1527 = vpow2.f32 %v1334_v26 }
 0x121   : > { %v1510_v46 = vpop.eup %1509  ;;  %v953_v0 = vadd.f32 %v1794_v44, %v916_v15  ;;  %v914_v47 = vmul.f32 %v1508_v33, %v1784_v38  ;;  %1529 = vpow2.f32 %v1316_v8  ;;  %v1020_v15 = vld [vmem:[%s2072_s3 + $0xd0] sm:$0xff] }
 0x122   : > { %v1512_v1 = vpop.eup %1511  ;;  %v935_v62 = vadd.f32 %v1794_v44, %v898_v61  ;;  %v903_v2 = vmul.f32 %v1510_v46, %v1784_v38  ;;  %1531 = vpow2.f32 %v1332_v59 }
 0x123   : > { %v1514_v63 = vpop.eup %1513  ;;  %v985_v5 = vmul.f32 %v1504_v29, %v953_v0  ;;  %v951_v6 = vadd.f32 %v1794_v44, %v914_v47  ;;  %v818_v7 = vadd.f32 1.0, %v1512_v1  ;;  %1533 = vpow2.f32 %v1319_v30 }
 0x124   : > { %v1516_v9 = vpop.eup %1515  ;;  %v967_v10 = vmul.f32 %v1506_v60, %v935_v62  ;;  %v940_v14 = vadd.f32 %v1794_v44, %v903_v2  ;;  %v800_v11 = vadd.f32 1.0, %v1514_v63  ;;  %1535 = vpow2.f32 %v1335_v40  ;;  %v1002_v40 = vld [vmem:[%s2072_s3 + $0x40] sm:$0xff] }
 0x125   : > { %v1518_v16 = vpop.eup %1517  ;;  %v1049_v19 = vadd.f32 %v1017_v53, %v985_v5  ;;  %v983_v20 = vmul.f32 %v1508_v33, %v951_v6  ;;  %1537 = vrcp.f32 %v818_v7  ;;  %v816_v22 = vadd.f32 1.0, %v1516_v9  ;;  %v1018_v53 = vld [vmem:[%s2072_s3 + $0xc0] sm:$0xff]  ;;  %v1005_v6 = vld [vmem:[%s2072_s3 + $0x58] sm:$0xff] }
 0x126   : > { %v1520_v12 = vpop.eup %1519  ;;  %v1031_v23 = vadd.f32 %v999_v3, %v967_v10  ;;  %v972_v24 = vmul.f32 %v1510_v46, %v940_v14  ;;  %1539 = vrcp.f32 %v800_v11  ;;  %v803_v25 = vadd.f32 1.0, %v1518_v16  ;;  %v1021_v11 = vld [vmem:[%s2072_s3 + $0xd8] sm:$0xff] }
 0x127   : > { %v1522_v27 = vpop.eup %1521  ;;  %1081 = vst [vmem:[%s1859_s25 + $0xb8] sm:$0xff] %v1049_v19  ;;  %v1047_v28 = vadd.f32 %v1015_v13, %v983_v20  ;;  %1541 = vrcp.f32 %v816_v22  ;;  %v819_v31 = vadd.f32 1.0, %v1520_v12  ;;  %v1003_v12 = vld [vmem:[%s2072_s3 + $0x48] sm:$0xff] }
 0x128   : > { %v1524_v32 = vpop.eup %1523  ;;  %1063 = vst [vmem:[%s1859_s25 + $0x28] sm:$0xff] %v1031_v23  ;;  %v1036_v34 = vadd.f32 %v1004_v21, %v972_v24  ;;  %1543 = vrcp.f32 %v803_v25  ;;  %v801_v35 = vadd.f32 1.0, %v1522_v27 }
 0x129   : > { %v1526_v36 = vpop.eup %1525  ;;  %1079 = vst [vmem:[%s1859_s25 + $0xa8] sm:$0xff] %v1047_v28  ;;  %1545 = vrcp.f32 %v819_v31  ;;  %v817_v37 = vadd.f32 1.0, %v1524_v32  ;;  %v1019_v31 = vld [vmem:[%s2072_s3 + $0xc8] sm:$0xff] }
 0x12a   : > { %v1528_v39 = vpop.eup %1527  ;;  %1068 = vst [vmem:[%s1859_s25 + $0x50] sm:$0xff] %v1036_v34  ;;  %1547 = vrcp.f32 %v801_v35  ;;  %v806_v41 = vadd.f32 1.0, %v1526_v36 }
 0x12b   : > { %v1530_v42 = vpop.eup %1529  ;;  %1549 = vrcp.f32 %v817_v37  ;;  %v822_v43 = vadd.f32 1.0, %v1528_v39  ;;  %v1008_v39 = vld [vmem:[%s2072_s3 + $0x70] sm:$0xff] }
 0x12c   : > { %v1532_v45 = vpop.eup %1531  ;;  %1551 = vrcp.f32 %v806_v41  ;;  %v804_v48 = vadd.f32 1.0, %v1530_v42 }
 0x12d   : > { %v1534_v49 = vpop.eup %1533  ;;  %1553 = vrcp.f32 %v822_v43  ;;  %v820_v50 = vadd.f32 1.0, %v1532_v45 }
 0x12e   : > { %v1536_v51 = vpop.eup %1535  ;;  %1555 = vrcp.f32 %v804_v48  ;;  %v807_v52 = vadd.f32 1.0, %v1534_v49  ;;  %v1024_v49 = vld [vmem:[%s2072_s3 + $0xf0] sm:$0xff] }
 0x12f   : > { %v1538_v56 = vpop.eup %1537  ;;  %1557 = vrcp.f32 %v820_v50  ;;  %v823_v57 = vadd.f32 1.0, %v1536_v51 }
 0x130   : > { %v1540_v18 = vpop.eup %1539  ;;  %v919_v58 = vmul.f32 %v1538_v56, %v1784_v38  ;;  %1559 = vrcp.f32 %v807_v52 }
 0x131   : > { %v1542_v26 = vpop.eup %1541  ;;  %v901_v8 = vmul.f32 %v1540_v18, %v1784_v38  ;;  %1561 = vrcp.f32 %v823_v57  ;;  %v1006_v57 = vld [vmem:[%s2072_s3 + $0x60] sm:$0xff] }
 0x132   : > { %v1544_v29 = vpop.eup %1543  ;;  %v956_v59 = vadd.f32 %v1794_v44, %v919_v58  ;;  %v917_v60 = vmul.f32 %v1542_v26, %v1784_v38  ;;  %1563 = vpow2.f32 %v1317_v55 }
 0x133   : > { %v1546_v4 = vpop.eup %1545  ;;  %v938_v54 = vadd.f32 %v1794_v44, %v901_v8  ;;  %v904_v30 = vmul.f32 %v1544_v29, %v1784_v38  ;;  %1565 = vpow2.f32 %v1333_v17 }
 0x134   : > { %v1548_v33 = vpop.eup %1547  ;;  %v988_v61 = vmul.f32 %v1538_v56, %v956_v59  ;;  %v954_v46 = vadd.f32 %v1794_v44, %v917_v60  ;;  %v920_v0 = vmul.f32 %v1546_v4, %v1784_v38 }
 0x135   : > { %v1550_v47 = vpop.eup %1549  ;;  %v970_v1 = vmul.f32 %v1540_v18, %v938_v54  ;;  %v941_v62 = vadd.f32 %v1794_v44, %v904_v30  ;;  %v902_v2 = vmul.f32 %v1548_v33, %v1784_v38  ;;  %v1009_v54 = vld [vmem:[%s2072_s3 + $0x78] sm:$0xff] }
 0x136   : > { %v1552_v63 = vpop.eup %1551  ;;  %v1052_v5 = vadd.f32 %v1020_v15, %v988_v61  ;;  %v986_v3 = vmul.f32 %v1542_v26, %v954_v46  ;;  %v957_v7 = vadd.f32 %v1794_v44, %v920_v0  ;;  %v918_v9 = vmul.f32 %v1550_v47, %v1784_v38  ;;  %v1025_v46 = vld [vmem:[%s2072_s3 + $0xf8] sm:$0xff] }
 0x137   : > { %v1554_v10 = vpop.eup %1553  ;;  %v1034_v13 = vadd.f32 %v1002_v40, %v970_v1  ;;  %v973_v14 = vmul.f32 %v1544_v29, %v941_v62  ;;  %v939_v16 = vadd.f32 %v1794_v44, %v902_v2  ;;  %v907_v19 = vmul.f32 %v1552_v63, %v1784_v38  ;;  %v1022_v29 = vld [vmem:[%s2072_s3 + $0xe0] sm:$0xff] }
 0x138   : > { %v1556_v20 = vpop.eup %1555  ;;  %1084 = vst [vmem:[%s1859_s25 + $0xd0] sm:$0xff] %v1052_v5  ;;  %v1050_v21 = vadd.f32 %v1018_v53, %v986_v3  ;;  %v989_v22 = vmul.f32 %v1546_v4, %v957_v7  ;;  %v955_v23 = vadd.f32 %v1794_v44, %v918_v9  ;;  %v923_v24 = vmul.f32 %v1554_v10, %v1784_v38 }
 0x139   : > { %v1558_v25 = vpop.eup %1557  ;;  %1066 = vst [vmem:[%s1859_s25 + $0x40] sm:$0xff] %v1034_v13  ;;  %v1037_v27 = vadd.f32 %v1005_v6, %v973_v14  ;;  %v971_v28 = vmul.f32 %v1548_v33, %v939_v16  ;;  %v944_v32 = vadd.f32 %v1794_v44, %v907_v19  ;;  %v905_v34 = vmul.f32 %v1556_v20, %v1784_v38  ;;  %v1007_v6 = vld [vmem:[%s2072_s3 + $0x68] sm:$0xff] }
 0x13a   : > { %v1560_v35 = vpop.eup %1559  ;;  %1082 = vst [vmem:[%s1859_s25 + $0xc0] sm:$0xff] %v1050_v21  ;;  %v1053_v36 = vadd.f32 %v1021_v11, %v989_v22  ;;  %v987_v37 = vmul.f32 %v1550_v47, %v955_v23  ;;  %v960_v41 = vadd.f32 %v1794_v44, %v923_v24  ;;  %v921_v42 = vmul.f32 %v1558_v25, %v1784_v38 }
 0x13b   : > { %v1562_v43 = vpop.eup %1561  ;;  %1069 = vst [vmem:[%s1859_s25 + $0x58] sm:$0xff] %v1037_v27  ;;  %v1035_v45 = vadd.f32 %v1003_v12, %v971_v28  ;;  %v976_v48 = vmul.f32 %v1552_v63, %v944_v32  ;;  %v942_v50 = vadd.f32 %v1794_v44, %v905_v34  ;;  %v908_v51 = vmul.f32 %v1560_v35, %v1784_v38 }
 0x13c   : > { %v1564_v52 = vpop.eup %1563  ;;  %1085 = vst [vmem:[%s1859_s25 + $0xd8] sm:$0xff] %v1053_v36  ;;  %v1051_v55 = vadd.f32 %v1019_v31, %v987_v37  ;;  %v992_v56 = vmul.f32 %v1554_v10, %v960_v41  ;;  %v958_v17 = vadd.f32 %v1794_v44, %v921_v42  ;;  %v924_v18 = vmul.f32 %v1562_v43, %v1784_v38  ;;  %v1023_v10 = vld [vmem:[%s2072_s3 + $0xe8] sm:$0xff] }
 0x13d   : > { %v1566_v58 = vpop.eup %1565  ;;  %1067 = vst [vmem:[%s1859_s25 + $0x48] sm:$0xff] %v1035_v45  ;;  %v1040_v26 = vadd.f32 %v1008_v39, %v976_v48  ;;  %v974_v8 = vmul.f32 %v1556_v20, %v942_v50  ;;  %v945_v59 = vadd.f32 %v1794_v44, %v908_v51  ;;  %v805_v60 = vadd.f32 1.0, %v1564_v52 }
 0x13e   : > { %1083 = vst [vmem:[%s1859_s25 + $0xc8] sm:$0xff] %v1051_v55  ;;  %v1056_v4 = vadd.f32 %v1024_v49, %v992_v56  ;;  %v990_v15 = vmul.f32 %v1558_v25, %v958_v17  ;;  %v961_v30 = vadd.f32 %v1794_v44, %v924_v18  ;;  %v821_v33 = vadd.f32 1.0, %v1566_v58 }
 0x13f   : > { %1072 = vst [vmem:[%s1859_s25 + $0x70] sm:$0xff] %v1040_v26  ;;  %v1038_v61 = vadd.f32 %v1006_v57, %v974_v8  ;;  %v977_v40 = vmul.f32 %v1560_v35, %v945_v59  ;;  %1567 = vrcp.f32 %v805_v60 }
 0x140   : > { %1088 = vst [vmem:[%s1859_s25 + $0xf0] sm:$0xff] %v1056_v4  ;;  %v1054_v0 = vadd.f32 %v1022_v29, %v990_v15  ;;  %v993_v47 = vmul.f32 %v1562_v43, %v961_v30  ;;  %1569 = vrcp.f32 %v821_v33 }
 0x141   : > { %1070 = vst [vmem:[%s1859_s25 + $0x60] sm:$0xff] %v1038_v61  ;;  %v1041_v1 = vadd.f32 %v1009_v54, %v977_v40 }
 0x142   : > { %1086 = vst [vmem:[%s1859_s25 + $0xe0] sm:$0xff] %v1054_v0  ;;  %v1057_v53 = vadd.f32 %v1025_v46, %v993_v47 }
 0x143   : > { %1073 = vst [vmem:[%s1859_s25 + $0x78] sm:$0xff] %v1041_v1 }
 0x144   : > { %1089 = vst [vmem:[%s1859_s25 + $0xf8] sm:$0xff] %v1057_v53 }
 0x149   : > { %v1568_v62 = vpop.eup %1567 }
 0x14a   : > { %v1570_v2 = vpop.eup %1569  ;;  %v906_v63 = vmul.f32 %v1568_v62, %v1784_v38 }
 0x14b   : > { %v922_v5 = vmul.f32 %v1570_v2, %v1784_v38 }
 0x14c   : > { %v943_v3 = vadd.f32 %v1794_v44, %v906_v63 }
 0x14d   : > { %v959_v7 = vadd.f32 %v1794_v44, %v922_v5 }
 0x14e   : > { %v975_v9 = vmul.f32 %v1568_v62, %v943_v3 }
 0x14f   : > { %v991_v13 = vmul.f32 %v1570_v2, %v959_v7 }
 0x150   : > { %v1039_v14 = vadd.f32 %v1007_v6, %v975_v9 }
 0x151   : > { %v1055_v11 = vadd.f32 %v1023_v10, %v991_v13 }
 0x152   : > { %1071 = vst [vmem:[%s1859_s25 + $0x68] sm:$0xff] %v1039_v14 }
 0x153   : > { %1087 = vst [vmem:[%s1859_s25 + $0xe8] sm:$0xff] %v1055_v11 }
 0x154 PF: > { %s16_s20 = sadd.s32 1, %s1593_s20   ;;  %s2075_s18 = smov %s1589_s19 }
 0x155   : > { %p13_p5 = scmp.ge.s32.totalorder %s16_s20, 4   ;;  %s2076_s19 = smov %s2078_s21 }
 0x157   :  { %15 = sbr.rel (!%p13_p5) target bundleno = 2 (0x2), region = 81 }

// kernel: idetect_forward_pallas.5
= control target key start
LH: loop header
LB: loop body
LE: loop exit
PB: predicated region body
PF: predicated region fallthrough
CT: control target
= control target key end

     0   :  { %s910_s18 = smov 0   ;;  %s912_s19 = smov 0   ;;  %s1023_s0 = inlined_call_operand.vmem [shape: bf16[2,8,8,64], index: 0, kind: input, shape index: {}]   ;;  %s1024_s1 = inlined_call_operand.vmem [shape: bf16[64,128], index: 1, kind: input, shape index: {}]   ;;  %s1025_s2 = inlined_call_operand.vmem [shape: f32[8,128], index: 2, kind: input, shape index: {}]   ;;  %s1026_s3 = inlined_call_operand.vmem [shape: f32[8,8,128], index: 3, kind: input, shape index: {}]   ;;  %s1027_s4 = inlined_call_operand.vmem [shape: f32[2,8,8,128], index: 4, kind: output, shape index: {0}]   ;;  %s1028_s5 = inlined_call_operand.vmem [shape: f32[2,8,8,128], index: 5, kind: output, shape index: {1}]  }
   0x1   :  { %s914_s20 = smov 0  }
   0x2 LB: > { %s25_s21 = sadd.s32 1, %s874_s19  ;;  %p725_p0 = scmp.ge.s32.totalorder %s878_s20, 1  ;;  %s878_s20 = sphi %s914_s20, %s16_s20   ;;  %s874_s19 = sphi %s912_s19, %s1030_s19   ;;  %s870_s18 = sphi %s910_s18, %s1029_s18  }
   0x3   : > { %p26_p1 = scmp.ge.s32.totalorder %s25_s21, 2  ;;  %p224_p2 = scmp.lt.s32.totalorder %s878_s20, 3 }
   0x5   : > { %s1032_s21 = smov (%p26_p1, %s25_s21), 0  ;;  %p225_p3 = pnand %p725_p0, %p224_p2 }
   0x6   : > { %v816_v0 = vld [vmem:[%s1024_s1] sm:$0xff] (!%p225_p3)   ;;  %p275_p4 = scmp.lt.s32.totalorder (!%p225_p3), %s870_s18, 1  ;;  %v817_v1 = vld [vmem:[%s1024_s1 + $0x8] sm:$0xff] (!%p225_p3)   ;;  %v818_v2 = vld [vmem:[%s1024_s1 + $0x10] sm:$0xff] (!%p225_p3)   ;;  %vm376_vm0 = vcmask (!%p225_p3), 523264  }
   0x7   : > { %228 = sbr.rel (%p225_p3) target bundleno = 279 (0x117), region = 36  ;;  %768 = vmatprep.subr.bf16.mxu0 (!%p225_p3), %v816_v0  ;;  %784 = vmatprep.subr.bf16.mxu1 (!%p225_p3), %v816_v0  ;;  %v819_v5 = vld [vmem:[%s1024_s1 + $0x18] sm:$0xff] (!%p225_p3)   ;;  %v732_v8 = vld [vmem:[%s1025_s2] ss:$0 sm:$0xff] (!%p225_p3)  ;;  %v753_v49 = vld [vmem:[%s1025_s2 + $0x2] ss:$0 sm:$0xff] (!%p225_p3) }
   0x8   : > { %769 = vmatpush3.bf16.msra.mxu0 (!%p225_p3), %v816_v0  ;;  %788 = vmatpush3.bf16.msra.mxu1 (!%p225_p3), %v816_v0  ;;  %v754_v51 = vld [vmem:[%s1025_s2 + $0x1] ss:$0 sm:$0xff] (!%p225_p3)  ;;  %v546_v60 = vld [vmem:[%s1026_s3 + $0x10] sm:$0xff] (!%p225_p3) }
   0x9   : > { %770 = vmatprep.subr.bf16.mxu0 (!%p225_p3), %v817_v1  ;;  %785 = vmatprep.subr.bf16.mxu1 (!%p225_p3), %v817_v1 }
   0xc   : > { %771 = vmatpush3.bf16.msra.mxu0 (!%p225_p3), %v817_v1  ;;  %789 = vmatpush3.bf16.msra.mxu1 (!%p225_p3), %v817_v1  ;;  %v550_v1 = vld [vmem:[%s1026_s3 + $0x30] sm:$0xff] (!%p225_p3) }
   0xd   : > { %772 = vmatprep.subr.bf16.mxu0 (!%p225_p3), %v818_v2  ;;  %786 = vmatprep.subr.bf16.mxu1 (!%p225_p3), %v818_v2 }
   0xe   : > { %s1034_s18 = smov (!%p275_p4, %s870_s18), 1 }
   0xf   : > { %s757_s28 = sshll.u32 %s1034_s18, 5  ;;  %s758_s9 = sshll.u32 %s1034_s18, 6 }
  0x10   : > { %s282_s6 = scalar_lea.vmem %s1023_s0, %s757_s28  ;;  %773 = vmatpush3.bf16.msra.mxu0 %v818_v2  ;;  %790 = vmatpush3.bf16.msra.mxu1 %v818_v2  ;;  %s959_s14 = scalar_lea.vmem %s1027_s4, %s758_s9 }
  0x11   : > { %v820_v3 = vld [vmem:[%s282_s6] sm:$0xff]   ;;  %v821_v4 = vld [vmem:[%s282_s6 + $0x10] sm:$0xff]   ;;  %774 = vmatprep.subr.bf16.mxu0 %v819_v5  ;;  %787 = vmatprep.subr.bf16.mxu1 %v819_v5  ;;  %v822_v6 = vld [vmem:[%s282_s6 + $0x8] sm:$0xff]   ;;  %s986_s29 = scalar_lea.vmem %s1028_s5, %s758_s9 }
  0x12   : > { %776 = vmatprep.mubr.msk.bf16.mxu0 %vm376_vm0, %v820_v3  ;;  %780 = vmatprep.mubr.msk.bf16.mxu1 %vm376_vm0, %v821_v4  ;;  %v823_v7 = vld [vmem:[%s282_s6 + $0x18] sm:$0xff]  }
  0x14   : > { %775 = vmatpush3.bf16.msra.mxu0 %v819_v5  ;;  %791 = vmatpush3.bf16.msra.mxu1 %v819_v5 }
  0x17   : > { %777 = vmatmul.mubr.msk.bf16.vlgmr.msra.gmra.mrb[0].mxu0 %vm376_vm0, %v822_v6  ;;  %781 = vmatmul.mubr.msk.bf16.vlgmr.msra.gmra.mrb[0].mxu1 %vm376_vm0, %v823_v7  ;;  %v544_v6 = vld [vmem:[%s1026_s3] sm:$0xff] }
  0xea   : > { %v778_v9 = vpop.f32.mrb[0].mxu0  ;;  %v782_v10 = vpop.f32.mrb[0].mxu1 }
  0xeb   : > { %v432_v11 = vadd.f32 %v778_v9, %v732_v8  ;;  %v448_v12 = vadd.f32 %v782_v10, %v732_v8  ;;  %v423_v13 = vpop.f32.mrb[1].mxu0  ;;  %v439_v14 = vpop.f32.mrb[1].mxu1 }
  0xec   : > { %v424_v15 = vadd.f32 %v732_v8, %v423_v13  ;;  %v440_v16 = vadd.f32 %v732_v8, %v439_v14  ;;  %v779_v17 = vpop.f32.mrb[2].mxu0  ;;  %v783_v18 = vpop.f32.mrb[2].mxu1 }
  0xed   : > { %456 = vst [vmem:[%s959_s14 + $0x10] sm:$0xff] %v432_v11  ;;  %v747_v19 = vmul.f32 -1.442695, %v432_v11  ;;  %460 = vst [vmem:[%s959_s14 + $0x30] sm:$0xff] %v448_v12  ;;  %v751_v20 = vmul.f32 -1.442695, %v448_v12  ;;  %v435_v21 = vadd.f32 %v779_v17, %v732_v8  ;;  %v451_v22 = vadd.f32 %v783_v18, %v732_v8 }
  0xee   : > { %v426_v23 = vpop.f32.mrb[3].mxu0  ;;  %v442_v24 = vpop.f32.mrb[3].mxu1  ;;  %454 = vst [vmem:[%s959_s14] sm:$0xff] %v424_v15  ;;  %v745_v25 = vmul.f32 -1.442695, %v424_v15  ;;  %458 = vst [vmem:[%s959_s14 + $0x20] sm:$0xff] %v440_v16  ;;  %v548_v12 = vld [vmem:[%s1026_s3 + $0x20] sm:$0xff] }
  0xef   : > { %v749_v26 = vmul.f32 -1.442695, %v440_v16  ;;  %v427_v27 = vadd.f32 %v732_v8, %v426_v23  ;;  %v443_v28 = vadd.f32 %v732_v8, %v442_v24  ;;  %824 = vpow2.f32 %v747_v19  ;;  %457 = vst [vmem:[%s959_s14 + $0x18] sm:$0xff] %v435_v21  ;;  %461 = vst [vmem:[%s959_s14 + $0x38] sm:$0xff] %v451_v22  ;;  %v547_v17 = vld [vmem:[%s1026_s3 + $0x18] sm:$0xff] }
  0xf0   : > { %v748_v29 = vmul.f32 -1.442695, %v435_v21  ;;  %826 = vpow2.f32 %v751_v20  ;;  %v752_v30 = vmul.f32 -1.442695, %v451_v22  ;;  %v551_v22 = vld [vmem:[%s1026_s3 + $0x38] sm:$0xff] }
  0xf1   : > { %455 = vst [vmem:[%s959_s14 + $0x8] sm:$0xff] %v427_v27  ;;  %459 = vst [vmem:[%s959_s14 + $0x28] sm:$0xff] %v443_v28  ;;  %828 = vpow2.f32 %v745_v25  ;;  %v746_v31 = vmul.f32 -1.442695, %v427_v27  ;;  %v750_v32 = vmul.f32 -1.442695, %v443_v28 }
  0xf2   : > { %830 = vpow2.f32 %v749_v26  ;;  %v545_v26 = vld [vmem:[%s1026_s3 + $0x8] sm:$0xff] }
  0xf3   : > { %832 = vpow2.f32 %v748_v29 }
  0xf4   : > { %834 = vpow2.f32 %v752_v30  ;;  %v549_v30 = vld [vmem:[%s1026_s3 + $0x28] sm:$0xff] }
  0xf5   : > { %836 = vpow2.f32 %v746_v31 }
  0xf6   : > { %838 = vpow2.f32 %v750_v32 }
  0xf9   : > { %v825_v33 = vpop.eup %824 }
  0xfa   : > { %v827_v34 = vpop.eup %826  ;;  %v488_v35 = vadd.f32 1.0, %v825_v33 }
  0xfb   : > { %v829_v36 = vpop.eup %828  ;;  %v492_v37 = vadd.f32 1.0, %v827_v34 }
  0xfc   : > { %v831_v38 = vpop.eup %830  ;;  %840 = vrcp.f32 %v488_v35  ;;  %v486_v39 = vadd.f32 1.0, %v829_v36 }
  0xfd   : > { %v833_v40 = vpop.eup %832  ;;  %842 = vrcp.f32 %v492_v37  ;;  %v490_v41 = vadd.f32 1.0, %v831_v38 }
  0xfe   : > { %v835_v42 = vpop.eup %834  ;;  %844 = vrcp.f32 %v486_v39  ;;  %v489_v43 = vadd.f32 1.0, %v833_v40 }
  0xff   : > { %v837_v44 = vpop.eup %836  ;;  %846 = vrcp.f32 %v490_v41  ;;  %v493_v45 = vadd.f32 1.0, %v835_v42 }
 0x100   : > { %v839_v46 = vpop.eup %838  ;;  %848 = vrcp.f32 %v489_v43  ;;  %v487_v47 = vadd.f32 1.0, %v837_v44 }
 0x101   : > { %850 = vrcp.f32 %v493_v45  ;;  %v491_v48 = vadd.f32 1.0, %v839_v46 }
 0x102   : > { %852 = vrcp.f32 %v487_v47 }
 0x103   : > { %854 = vrcp.f32 %v491_v48 }
 0x106   : > { %v841_v50 = vpop.eup %840 }
 0x107   : > { %v843_v52 = vpop.eup %842  ;;  %v517_v53 = vmul.f32 %v841_v50, %v753_v49 }
 0x108   : > { %v845_v54 = vpop.eup %844  ;;  %v521_v55 = vmul.f32 %v843_v52, %v753_v49 }
 0x109   : > { %v847_v56 = vpop.eup %846  ;;  %v530_v57 = vadd.f32 %v754_v51, %v517_v53  ;;  %v515_v58 = vmul.f32 %v845_v54, %v753_v49 }
 0x10a   : > { %v849_v59 = vpop.eup %848  ;;  %v534_v61 = vadd.f32 %v754_v51, %v521_v55  ;;  %v519_v62 = vmul.f32 %v847_v56, %v753_v49 }
 0x10b   : > { %v851_v63 = vpop.eup %850  ;;  %v538_v0 = vmul.f32 %v841_v50, %v530_v57  ;;  %v528_v2 = vadd.f32 %v754_v51, %v515_v58  ;;  %v518_v3 = vmul.f32 %v849_v59, %v753_v49 }
 0x10c   : > { %v853_v4 = vpop.eup %852  ;;  %v542_v5 = vmul.f32 %v843_v52, %v534_v61  ;;  %v532_v7 = vadd.f32 %v754_v51, %v519_v62  ;;  %v522_v8 = vmul.f32 %v851_v63, %v753_v49 }
 0x10d   : > { %v855_v9 = vpop.eup %854  ;;  %v554_v10 = vadd.f32 %v546_v60, %v538_v0  ;;  %v536_v11 = vmul.f32 %v845_v54, %v528_v2  ;;  %v531_v13 = vadd.f32 %v754_v51, %v518_v3  ;;  %v516_v14 = vmul.f32 %v853_v4, %v753_v49 }
 0x10e   : > { %v558_v15 = vadd.f32 %v550_v1, %v542_v5  ;;  %v540_v16 = vmul.f32 %v847_v56, %v532_v7  ;;  %v535_v18 = vadd.f32 %v754_v51, %v522_v8  ;;  %v520_v19 = vmul.f32 %v855_v9, %v753_v49 }
 0x10f   : > { %562 = vst [vmem:[%s986_s29 + $0x10] sm:$0xff] %v554_v10  ;;  %v552_v20 = vadd.f32 %v544_v6, %v536_v11  ;;  %v539_v21 = vmul.f32 %v849_v59, %v531_v13  ;;  %v529_v23 = vadd.f32 %v754_v51, %v516_v14 }
 0x110   : > { %566 = vst [vmem:[%s986_s29 + $0x30] sm:$0xff] %v558_v15  ;;  %v556_v24 = vadd.f32 %v548_v12, %v540_v16  ;;  %v543_v25 = vmul.f32 %v851_v63, %v535_v18  ;;  %v533_v27 = vadd.f32 %v754_v51, %v520_v19 }
 0x111   : > { %560 = vst [vmem:[%s986_s29] sm:$0xff] %v552_v20  ;;  %v555_v28 = vadd.f32 %v547_v17, %v539_v21  ;;  %v537_v29 = vmul.f32 %v853_v4, %v529_v23 }
 0x112   : > { %564 = vst [vmem:[%s986_s29 + $0x20] sm:$0xff] %v556_v24  ;;  %v559_v31 = vadd.f32 %v551_v22, %v543_v25  ;;  %v541_v32 = vmul.f32 %v855_v9, %v533_v27 }
 0x113   : > { %563 = vst [vmem:[%s986_s29 + $0x18] sm:$0xff] %v555_v28  ;;  %v553_v33 = vadd.f32 %v545_v26, %v537_v29 }
 0x114   : > { %567 = vst [vmem:[%s986_s29 + $0x38] sm:$0xff] %v559_v31  ;;  %v557_v34 = vadd.f32 %v549_v30, %v541_v32 }
 0x115   : > { %561 = vst [vmem:[%s986_s29 + $0x8] sm:$0xff] %v553_v33 }
 0x116   : > { %565 = vst [vmem:[%s986_s29 + $0x28] sm:$0xff] %v557_v34 }
 0x117 PF: > { %s16_s20 = sadd.s32 1, %s878_s20   ;;  %s1029_s18 = smov %s874_s19 }
 0x118   : > { %p13_p5 = scmp.ge.s32.totalorder %s16_s20, 4   ;;  %s1030_s19 = smov %s1032_s21 }
 0x11a   :  { %15 = sbr.rel (!%p13_p5) target bundleno = 2 (0x2), region = 81 }

// kernel: idetect_forward_pallas.3
= control target key start
LH: loop header
LB: loop body
LE: loop exit
PB: predicated region body
PF: predicated region fallthrough
CT: control target
= control target key end

     0   :  { %s2611_s18 = smov 0   ;;  %s2613_s19 = smov 0   ;;  %s3490_s0 = inlined_call_operand.vmem [shape: bf16[2,32,32,16], index: 0, kind: input, shape index: {}]   ;;  %s3491_s1 = inlined_call_operand.vmem [shape: bf16[16,128], index: 1, kind: input, shape index: {}]   ;;  %s3492_s2 = inlined_call_operand.vmem [shape: f32[8,128], index: 2, kind: input, shape index: {}]   ;;  %s3493_s3 = inlined_call_operand.vmem [shape: f32[32,32,128], index: 3, kind: input, shape index: {}]   ;;  %s3494_s4 = inlined_call_operand.vmem [shape: f32[2,32,32,128], index: 4, kind: output, shape index: {0}]   ;;  %s3495_s5 = inlined_call_operand.vmem [shape: f32[2,32,32,128], index: 5, kind: output, shape index: {1}]  }
   0x1   :  { %s2615_s20 = smov 0   ;;  %s2617_s21 = smov 0  }
   0x2   :  { %s2619_s22 = smov 0  }
   0x3 LB: > { %s25_s23 = sadd.s32 1, %s2571_s20  ;;  %s28_s24 = sadd.s32 1, %s2575_s21  ;;  %s2579_s22 = sphi %s2619_s22, %s16_s22   ;;  %s2575_s21 = sphi %s2617_s21, %s3499_s21   ;;  %s2571_s20 = sphi %s2615_s20, %s3498_s20   ;;  %s2567_s19 = sphi %s2613_s19, %s3497_s19   ;;  %s2563_s18 = sphi %s2611_s18, %s3496_s18  }
   0x4   : > { %p26_p0 = scmp.ge.s32.totalorder %s25_s23, 2  ;;  %p1957_p1 = scmp.ge.s32.totalorder %s2579_s22, 1 }
   0x5   : > { %p226_p2 = scmp.lt.s32.totalorder %s2579_s22, 5 }
   0x6   : > { %s3501_s23 = smov (%p26_p0, %s25_s23), 0  ;;  %s3503_s24 = smov (!%p26_p0, %s28_s24), %s2575_s21 }
   0x7   : > { %p227_p3 = pnand %p1957_p1, %p226_p2  ;;  %p30_p4 = scmp.ge.s32.totalorder %s3503_s24, 2 }
   0x8   : > { %v2249_v0 = vld [vmem:[%s3491_s1] sm:$0xff] (!%p227_p3)   ;;  %s1958_s27 = sshll.u32 (!%p227_p3), %s2567_s19, 4  ;;  %p281_p5 = scmp.lt.s32.totalorder (!%p227_p3), %s2563_s18, 1  ;;  %vm558_vm0 = vcmask (!%p227_p3), 130048  }
   0x9   : > { %s3505_s24 = smov (%p30_p4, %s3503_s24), 0  ;;  %230 = sbr.rel (%p227_p3) target bundleno = 415 (0x19f), region = 36 }
   0xa   : > { %p283_p6 = scmp.lt.s32.totalorder (!%p227_p3), %s1958_s27, 31  ;;  %2141 = vmatprep.subr.bf16.mxu0 (!%p227_p3), %v2249_v0  ;;  %2207 = vmatprep.subr.bf16.mxu1 (!%p227_p3), %v2249_v0  ;;  %v2723_v33 = vld [vmem:[%s3492_s2] ss:$0 sm:$0xff] (!%p227_p3) }
   0xb   : > { %2142 = vmatpush3.bf16.msra.mxu0 (!%p227_p3), %v2249_v0  ;;  %2208 = vmatpush3.bf16.msra.mxu1 (!%p227_p3), %v2249_v0 }
  0x10   : > { %s3507_s18 = smov (!%p281_p5, %s2563_s18), 1  ;;  %s3509_s27 = smov (!%p283_p6, %s1958_s27), 31 }
  0x11   : > { %s1960_s28 = sshll.u32 %s3507_s18, 7  ;;  %s1959_s29 = sshll.u32 %s3509_s27, 2 }
  0x12   : > { %s2647_s30 = sadd.s32 %s1960_s28, %s1959_s29  ;;  %s2107_s18 = sshll.u32 %s3509_s27, 5 }
  0x13   : > { %s1961_s6 = sshll.u32 %s2647_s30, 2  ;;  %s1968_s10 = sshll.u32 %s2647_s30, 3 }
  0x14   : > { %s2653_s9 = scalar_lea.vmem %s3490_s0, %s1961_s6  ;;  %s2730_s15 = scalar_lea.vmem %s3494_s4, %s1968_s10 }
  0x15   : > { %v2250_v1 = vld [vmem:[%s2653_s9] sm:$0xff]   ;;  %v2252_v3 = vld [vmem:[%s2653_s9 + $0x8] sm:$0xff]   ;;  %v2254_v5 = vld [vmem:[%s2653_s9 + $0x10] sm:$0xff]   ;;  %s2851_s28 = scalar_lea.vmem %s3493_s3, %s2107_s18  ;;  %s2900_s7 = scalar_lea.vmem %s3495_s5, %s1968_s10 }
  0x16   : > { %v2251_v2 = vld [vmem:[%s2653_s9 + $0x80] sm:$0xff]   ;;  %2143 = vmatprep.mubr.msk.bf16.mxu0 %vm558_vm0, %v2250_v1  ;;  %v2253_v4 = vld [vmem:[%s2653_s9 + $0x88] sm:$0xff]   ;;  %v2255_v6 = vld [vmem:[%s2653_s9 + $0x90] sm:$0xff]  }
  0x17   : > { %2175 = vmatprep.mubr.msk.bf16.mxu1 %vm558_vm0, %v2251_v2  ;;  %2144 = vmatmul.mubr.msk.bf16.vlgmr.msra.gmra.mrb[0].mxu0 %vm558_vm0, %v2252_v3  ;;  %v2256_v7 = vld [vmem:[%s2653_s9 + $0x18] sm:$0xff]   ;;  %v2258_v9 = vld [vmem:[%s2653_s9 + $0x20] sm:$0xff]   ;;  %v2260_v11 = vld [vmem:[%s2653_s9 + $0x28] sm:$0xff]  }
  0x18   : > { %2176 = vmatmul.mubr.msk.bf16.vlgmr.msra.gmra.mrb[0].mxu1 %vm558_vm0, %v2253_v4  ;;  %2147 = vmatprep.mubr.msk.bf16.mxu0 %vm558_vm0, %v2254_v5  ;;  %v2257_v8 = vld [vmem:[%s2653_s9 + $0x98] sm:$0xff]   ;;  %v2259_v10 = vld [vmem:[%s2653_s9 + $0xa0] sm:$0xff]   ;;  %v2261_v12 = vld [vmem:[%s2653_s9 + $0xa8] sm:$0xff]  }
  0x19   : > { %2179 = vmatprep.mubr.msk.bf16.mxu1 %vm558_vm0, %v2255_v6  ;;  %v2262_v13 = vld [vmem:[%s2653_s9 + $0x30] sm:$0xff]   ;;  %v2264_v15 = vld [vmem:[%s2653_s9 + $0x38] sm:$0xff]   ;;  %v2266_v17 = vld [vmem:[%s2653_s9 + $0x40] sm:$0xff]  }
  0x1a   : > { %v2263_v14 = vld [vmem:[%s2653_s9 + $0xb0] sm:$0xff]   ;;  %v2265_v16 = vld [vmem:[%s2653_s9 + $0xb8] sm:$0xff]   ;;  %v2267_v18 = vld [vmem:[%s2653_s9 + $0xc0] sm:$0xff]  }
  0x1b   : > { %v2268_v19 = vld [vmem:[%s2653_s9 + $0x48] sm:$0xff]   ;;  %v2270_v21 = vld [vmem:[%s2653_s9 + $0x50] sm:$0xff]   ;;  %v2272_v23 = vld [vmem:[%s2653_s9 + $0x58] sm:$0xff]  }
  0x1c   : > { %v2269_v20 = vld [vmem:[%s2653_s9 + $0xc8] sm:$0xff]   ;;  %v2271_v22 = vld [vmem:[%s2653_s9 + $0xd0] sm:$0xff]   ;;  %v2273_v24 = vld [vmem:[%s2653_s9 + $0xd8] sm:$0xff]  }
  0x1d   : > { %v2274_v25 = vld [vmem:[%s2653_s9 + $0x60] sm:$0xff]   ;;  %v2276_v27 = vld [vmem:[%s2653_s9 + $0x68] sm:$0xff]   ;;  %v2278_v29 = vld [vmem:[%s2653_s9 + $0x70] sm:$0xff]  }
  0x1e   : > { %v2275_v26 = vld [vmem:[%s2653_s9 + $0xe0] sm:$0xff]   ;;  %v2277_v28 = vld [vmem:[%s2653_s9 + $0xe8] sm:$0xff]   ;;  %v2279_v30 = vld [vmem:[%s2653_s9 + $0xf0] sm:$0xff]  }
  0x1f   : > { %2148 = vmatmul.mubr.msk.bf16.gmra.mrb[4].mxu0 %vm558_vm0, %v2256_v7  ;;  %v2280_v31 = vld [vmem:[%s2653_s9 + $0x78] sm:$0xff]  }
  0x20   : > { %2180 = vmatmul.mubr.msk.bf16.gmra.mrb[4].mxu1 %vm558_vm0, %v2257_v8  ;;  %2151 = vmatprep.mubr.msk.bf16.mxu0 %vm558_vm0, %v2258_v9  ;;  %v2281_v32 = vld [vmem:[%s2653_s9 + $0xf8] sm:$0xff]  }
  0x21   : > { %2183 = vmatprep.mubr.msk.bf16.mxu1 %vm558_vm0, %v2259_v10 }
  0x27   : > { %2152 = vmatmul.mubr.msk.bf16.gmra.mrb[8].mxu0 %vm558_vm0, %v2260_v11 }
  0x28   : > { %2184 = vmatmul.mubr.msk.bf16.gmra.mrb[8].mxu1 %vm558_vm0, %v2261_v12  ;;  %2155 = vmatprep.mubr.msk.bf16.mxu0 %vm558_vm0, %v2262_v13 }
  0x29   : > { %2187 = vmatprep.mubr.msk.bf16.mxu1 %vm558_vm0, %v2263_v14 }
  0x2f   : > { %2156 = vmatmul.mubr.msk.bf16.gmra.mrb[12].mxu0 %vm558_vm0, %v2264_v15 }
  0x30   : > { %2188 = vmatmul.mubr.msk.bf16.gmra.mrb[12].mxu1 %vm558_vm0, %v2265_v16  ;;  %2159 = vmatprep.mubr.msk.bf16.mxu0 %vm558_vm0, %v2266_v17 }
  0x31   : > { %2191 = vmatprep.mubr.msk.bf16.mxu1 %vm558_vm0, %v2267_v18 }
  0x37   : > { %2160 = vmatmul.mubr.msk.bf16.gmra.mrb[16].mxu0 %vm558_vm0, %v2268_v19 }
  0x38   : > { %2192 = vmatmul.mubr.msk.bf16.gmra.mrb[16].mxu1 %vm558_vm0, %v2269_v20  ;;  %2163 = vmatprep.mubr.msk.bf16.mxu0 %vm558_vm0, %v2270_v21 }
  0x39   : > { %2195 = vmatprep.mubr.msk.bf16.mxu1 %vm558_vm0, %v2271_v22 }
  0x3f   : > { %2164 = vmatmul.mubr.msk.bf16.gmra.mrb[20].mxu0 %vm558_vm0, %v2272_v23 }
  0x40   : > { %2196 = vmatmul.mubr.msk.bf16.gmra.mrb[20].mxu1 %vm558_vm0, %v2273_v24  ;;  %2167 = vmatprep.mubr.msk.bf16.mxu0 %vm558_vm0, %v2274_v25 }
  0x41   : > { %2199 = vmatprep.mubr.msk.bf16.mxu1 %vm558_vm0, %v2275_v26 }
  0x47   : > { %2168 = vmatmul.mubr.msk.bf16.gmra.mrb[24].mxu0 %vm558_vm0, %v2276_v27 }
  0x48   : > { %2200 = vmatmul.mubr.msk.bf16.gmra.mrb[24].mxu1 %vm558_vm0, %v2277_v28  ;;  %2171 = vmatprep.mubr.msk.bf16.mxu0 %vm558_vm0, %v2278_v29 }
  0x49   : > { %2203 = vmatprep.mubr.msk.bf16.mxu1 %vm558_vm0, %v2279_v30 }
  0x4f   : > { %2172 = vmatmul.mubr.msk.bf16.gmra.mrb[28].mxu0 %vm558_vm0, %v2280_v31 }
  0x50   : > { %2204 = vmatmul.mubr.msk.bf16.gmra.mrb[28].mxu1 %vm558_vm0, %v2281_v32 }
  0xea   : > { %v2145_v34 = vpop.f32.mrb[0].mxu0 }
  0xeb   : > { %v698_v35 = vadd.f32 %v2145_v34, %v2723_v33  ;;  %v2177_v36 = vpop.f32.mrb[0].mxu1  ;;  %v689_v37 = vpop.f32.mrb[1].mxu0 }
  0xec   : > { %v826_v38 = vadd.f32 %v2177_v36, %v2723_v33  ;;  %v690_v39 = vadd.f32 %v2723_v33, %v689_v37  ;;  %v817_v40 = vpop.f32.mrb[1].mxu1  ;;  %v2146_v41 = vpop.f32.mrb[2].mxu0 }
  0xed   : > { %946 = vst [vmem:[%s2730_s15 + $0x10] sm:$0xff] %v698_v35  ;;  %v2041_v42 = vmul.f32 -1.442695, %v698_v35  ;;  %v818_v43 = vadd.f32 %v2723_v33, %v817_v40  ;;  %v701_v44 = vadd.f32 %v2146_v41, %v2723_v33  ;;  %v2178_v45 = vpop.f32.mrb[2].mxu1  ;;  %v692_v46 = vpop.f32.mrb[3].mxu0 }
  0xee   : > { %978 = vst [vmem:[%s2730_s15 + $0x110] sm:$0xff] %v826_v38  ;;  %v2073_v47 = vmul.f32 -1.442695, %v826_v38  ;;  %944 = vst [vmem:[%s2730_s15] sm:$0xff] %v690_v39  ;;  %v2039_v48 = vmul.f32 -1.442695, %v690_v39  ;;  %v829_v49 = vadd.f32 %v2178_v45, %v2723_v33  ;;  %v693_v50 = vadd.f32 %v2723_v33, %v692_v46  ;;  %v820_v51 = vpop.f32.mrb[3].mxu1 }
  0xef   : > { %2282 = vpow2.f32 %v2041_v42  ;;  %976 = vst [vmem:[%s2730_s15 + $0x100] sm:$0xff] %v818_v43  ;;  %v2071_v52 = vmul.f32 -1.442695, %v818_v43  ;;  %947 = vst [vmem:[%s2730_s15 + $0x18] sm:$0xff] %v701_v44  ;;  %v2042_v53 = vmul.f32 -1.442695, %v701_v44  ;;  %v821_v54 = vadd.f32 %v2723_v33, %v820_v51 }
  0xf0   : > { %2284 = vpow2.f32 %v2073_v47  ;;  %979 = vst [vmem:[%s2730_s15 + $0x118] sm:$0xff] %v829_v49  ;;  %v2074_v55 = vmul.f32 -1.442695, %v829_v49  ;;  %945 = vst [vmem:[%s2730_s15 + $0x8] sm:$0xff] %v693_v50  ;;  %v2040_v56 = vmul.f32 -1.442695, %v693_v50 }
  0xf1   : > { %2286 = vpow2.f32 %v2039_v48  ;;  %977 = vst [vmem:[%s2730_s15 + $0x108] sm:$0xff] %v821_v54  ;;  %v2072_v57 = vmul.f32 -1.442695, %v821_v54  ;;  %v2810_v50 = vld [vmem:[%s3492_s2 + $0x2] ss:$0 sm:$0xff] }
  0xf2   : > { %2288 = vpow2.f32 %v2071_v52  ;;  %v2149_v58 = vpop.f32.mrb[4].mxu0 }
  0xf3   : > { %2290 = vpow2.f32 %v2042_v53  ;;  %v714_v59 = vadd.f32 %v2149_v58, %v2723_v33  ;;  %v2181_v60 = vpop.f32.mrb[4].mxu1  ;;  %v705_v61 = vpop.f32.mrb[5].mxu0 }
  0xf4   : > { %2292 = vpow2.f32 %v2074_v55  ;;  %v842_v62 = vadd.f32 %v2181_v60, %v2723_v33  ;;  %v706_v63 = vadd.f32 %v2723_v33, %v705_v61  ;;  %v833_v0 = vpop.f32.mrb[5].mxu1  ;;  %v2150_v1 = vpop.f32.mrb[6].mxu0  ;;  %v2826_v60 = vld [vmem:[%s3492_s2 + $0x1] ss:$0 sm:$0xff] }
  0xf5   : > { %2294 = vpow2.f32 %v2040_v56  ;;  %950 = vst [vmem:[%s2730_s15 + $0x30] sm:$0xff] %v714_v59  ;;  %v2045_v2 = vmul.f32 -1.442695, %v714_v59  ;;  %v834_v3 = vadd.f32 %v2723_v33, %v833_v0  ;;  %v717_v4 = vadd.f32 %v2150_v1, %v2723_v33  ;;  %v2182_v5 = vpop.f32.mrb[6].mxu1  ;;  %v708_v6 = vpop.f32.mrb[7].mxu0 }
  0xf6   : > { %2296 = vpow2.f32 %v2072_v57  ;;  %982 = vst [vmem:[%s2730_s15 + $0x130] sm:$0xff] %v842_v62  ;;  %v2077_v7 = vmul.f32 -1.442695, %v842_v62  ;;  %948 = vst [vmem:[%s2730_s15 + $0x20] sm:$0xff] %v706_v63  ;;  %v2043_v8 = vmul.f32 -1.442695, %v706_v63  ;;  %v2757_v9 = vadd.f32 %v2182_v5, %v2723_v33 }
  0xf7   : > { %v836_v10 = vpop.f32.mrb[7].mxu1  ;;  %2298 = vpow2.f32 %v2045_v2  ;;  %980 = vst [vmem:[%s2730_s15 + $0x120] sm:$0xff] %v834_v3  ;;  %v2075_v11 = vmul.f32 -1.442695, %v834_v3  ;;  %951 = vst [vmem:[%s2730_s15 + $0x38] sm:$0xff] %v717_v4  ;;  %v2762_v13 = vadd.f32 %v2723_v33, %v708_v6 }
  0xf8   : > { %v2046_v12 = vmul.f32 -1.442695, %v717_v4  ;;  %2300 = vpow2.f32 %v2077_v7  ;;  %983 = vst [vmem:[%s2730_s15 + $0x138] sm:$0xff] %v2757_v9  ;;  %v2767_v14 = vadd.f32 %v2723_v33, %v836_v10  ;;  %v2078_v55 = vmul.f32 -1.442695, %v2757_v9 }
  0xf9   : > { %v2283_v15 = vpop.eup %2282  ;;  %2302 = vpow2.f32 %v2043_v8  ;;  %949 = vst [vmem:[%s2730_s15 + $0x28] sm:$0xff] %v2762_v13  ;;  %v2044_v4 = vmul.f32 -1.442695, %v2762_v13 }
  0xfa   : > { %v2285_v16 = vpop.eup %2284  ;;  %v1202_v17 = vadd.f32 1.0, %v2283_v15  ;;  %2304 = vpow2.f32 %v2075_v11  ;;  %981 = vst [vmem:[%s2730_s15 + $0x128] sm:$0xff] %v2767_v14  ;;  %v2153_v18 = vpop.f32.mrb[8].mxu0  ;;  %v2076_v10 = vmul.f32 -1.442695, %v2767_v14 }
  0xfb   : > { %v2287_v19 = vpop.eup %2286  ;;  %v1234_v20 = vadd.f32 1.0, %v2285_v16  ;;  %2306 = vpow2.f32 %v2046_v12  ;;  %v2774_v21 = vadd.f32 %v2153_v18, %v2723_v33  ;;  %v2185_v22 = vpop.f32.mrb[8].mxu1 }
  0xfc   : > { %v721_v23 = vpop.f32.mrb[9].mxu0  ;;  %v2289_v24 = vpop.eup %2288  ;;  %2308 = vrcp.f32 %v1202_v17  ;;  %v1200_v25 = vadd.f32 1.0, %v2287_v19  ;;  %v2777_v26 = vadd.f32 %v2185_v22, %v2723_v33 }
  0xfd   : > { %v2780_v27 = vadd.f32 %v2723_v33, %v721_v23  ;;  %v849_v28 = vpop.f32.mrb[9].mxu1  ;;  %v2154_v29 = vpop.f32.mrb[10].mxu0  ;;  %2310 = vrcp.f32 %v1234_v20  ;;  %v1232_v31 = vadd.f32 1.0, %v2289_v24  ;;  %954 = vst [vmem:[%s2730_s15 + $0x50] sm:$0xff] %v2774_v21  ;;  %v2049_v11 = vmul.f32 -1.442695, %v2774_v21 }
  0xfe   : > { %v2291_v30 = vpop.eup %2290  ;;  %v2785_v32 = vadd.f32 %v2723_v33, %v849_v28  ;;  %v2186_v34 = vpop.f32.mrb[10].mxu1  ;;  %2312 = vrcp.f32 %v1200_v25  ;;  %986 = vst [vmem:[%s2730_s15 + $0x150] sm:$0xff] %v2777_v26  ;;  %v2794_v41 = vadd.f32 %v2154_v29, %v2723_v33  ;;  %v2855_v14 = vmul.f32 -1.442695, %v2777_v26  ;;  %v1596_v26 = vld [vmem:[%s2851_s28 + $0x10] sm:$0xff] }
  0xff   : > { %v724_v35 = vpop.f32.mrb[11].mxu0  ;;  %v2293_v36 = vpop.eup %2292  ;;  %v1203_v37 = vadd.f32 1.0, %v2291_v30  ;;  %952 = vst [vmem:[%s2730_s15 + $0x40] sm:$0xff] %v2780_v27  ;;  %2314 = vrcp.f32 %v1232_v31  ;;  %v2797_v44 = vadd.f32 %v2186_v34, %v2723_v33  ;;  %v2872_v24 = vmul.f32 -1.442695, %v2780_v27 }
 0x100   : > { %v852_v38 = vpop.f32.mrb[11].mxu1  ;;  %v2295_v39 = vpop.eup %2294  ;;  %v1235_v40 = vadd.f32 1.0, %v2293_v36  ;;  %984 = vst [vmem:[%s2730_s15 + $0x140] sm:$0xff] %v2785_v32  ;;  %v2800_v45 = vadd.f32 %v2723_v33, %v724_v35  ;;  %955 = vst [vmem:[%s2730_s15 + $0x58] sm:$0xff] %v2794_v41  ;;  %v2880_v30 = vmul.f32 -1.442695, %v2785_v32 }
 0x101   : > { %v2297_v42 = vpop.eup %2296  ;;  %2316 = vrcp.f32 %v1203_v37  ;;  %v1201_v43 = vadd.f32 1.0, %v2295_v39  ;;  %v2805_v48 = vadd.f32 %v2723_v33, %v852_v38  ;;  %987 = vst [vmem:[%s2730_s15 + $0x158] sm:$0xff] %v2797_v44  ;;  %v1628_v35 = vld [vmem:[%s2851_s28 + $0x110] sm:$0xff] }
 0x102   : > { %v2299_v46 = vpop.eup %2298  ;;  %2318 = vrcp.f32 %v1235_v40  ;;  %v1233_v47 = vadd.f32 1.0, %v2297_v42  ;;  %953 = vst [vmem:[%s2730_s15 + $0x48] sm:$0xff] %v2800_v45  ;;  %v2157_v52 = vpop.f32.mrb[12].mxu0  ;;  %v1594_v42 = vld [vmem:[%s2851_s28] sm:$0xff] }
 0x103   : > { %v2301_v49 = vpop.eup %2300  ;;  %2320 = vrcp.f32 %v1201_v43  ;;  %v1206_v51 = vadd.f32 1.0, %v2299_v46  ;;  %985 = vst [vmem:[%s2730_s15 + $0x148] sm:$0xff] %v2805_v48  ;;  %v2820_v56 = vadd.f32 %v2157_v52, %v2723_v33  ;;  %v2189_v57 = vpop.f32.mrb[12].mxu1 }
 0x104   : > { %v2303_v53 = vpop.eup %2302  ;;  %2322 = vrcp.f32 %v1233_v47  ;;  %v1238_v54 = vadd.f32 1.0, %v2301_v49  ;;  %v737_v58 = vpop.f32.mrb[13].mxu0  ;;  %v2829_v62 = vadd.f32 %v2189_v57, %v2723_v33 }
 0x105   : > { %v2305_v59 = vpop.eup %2304  ;;  %2324 = vrcp.f32 %v1206_v51  ;;  %v1204_v61 = vadd.f32 1.0, %v2303_v53  ;;  %v2832_v63 = vadd.f32 %v2723_v33, %v737_v58  ;;  %v865_v0 = vpop.f32.mrb[13].mxu1  ;;  %958 = vst [vmem:[%s2730_s15 + $0x70] sm:$0xff] %v2820_v56 }
 0x106   : > { %v2158_v1 = vpop.f32.mrb[14].mxu0  ;;  %v2307_v2 = vpop.eup %2306  ;;  %2326 = vrcp.f32 %v1238_v54  ;;  %v1236_v3 = vadd.f32 1.0, %v2305_v59  ;;  %v2838_v5 = vadd.f32 %v2723_v33, %v865_v0  ;;  %990 = vst [vmem:[%s2730_s15 + $0x170] sm:$0xff] %v2829_v62  ;;  %v1626_v54 = vld [vmem:[%s2851_s28 + $0x100] sm:$0xff] }
 0x107   : > { %v2190_v6 = vpop.f32.mrb[14].mxu1  ;;  %v740_v7 = vpop.f32.mrb[15].mxu0  ;;  %2328 = vrcp.f32 %v1204_v61  ;;  %v1207_v9 = vadd.f32 1.0, %v2307_v2  ;;  %956 = vst [vmem:[%s2730_s15 + $0x60] sm:$0xff] %v2832_v63  ;;  %v2860_v16 = vadd.f32 %v2158_v1, %v2723_v33  ;;  %v1597_v2 = vld [vmem:[%s2851_s28 + $0x18] sm:$0xff] }
 0x108   : > { %v2309_v8 = vpop.eup %2308  ;;  %v2846_v12 = vpop.f32.mrb[15].mxu1  ;;  %2330 = vrcp.f32 %v1236_v3  ;;  %988 = vst [vmem:[%s2730_s15 + $0x160] sm:$0xff] %v2838_v5  ;;  %v2864_v19 = vadd.f32 %v2190_v6, %v2723_v33  ;;  %v2867_v20 = vadd.f32 %v2723_v33, %v740_v7 }
 0x109   : > { %v2311_v13 = vpop.eup %2310  ;;  %v1399_v15 = vmul.f32 %v2309_v8, %v2810_v50  ;;  %2332 = vrcp.f32 %v1207_v9  ;;  %959 = vst [vmem:[%s2730_s15 + $0x78] sm:$0xff] %v2860_v16 }
 0x10a   : > { %v2313_v17 = vpop.eup %2312  ;;  %v1431_v18 = vmul.f32 %v2311_v13, %v2810_v50  ;;  %2334 = vpow2.f32 %v2078_v55  ;;  %991 = vst [vmem:[%s2730_s15 + $0x178] sm:$0xff] %v2864_v19  ;;  %957 = vst [vmem:[%s2730_s15 + $0x68] sm:$0xff] %v2867_v20  ;;  %v2886_v27 = vpop.f32.mrb[16].mxu0 }
 0x10b   : > { %v2315_v21 = vpop.eup %2314  ;;  %v1468_v22 = vadd.f32 %v2826_v60, %v1399_v15  ;;  %v1397_v23 = vmul.f32 %v2313_v17, %v2810_v50  ;;  %2336 = vpow2.f32 %v2044_v4  ;;  %v2891_v38 = vpop.f32.mrb[16].mxu1 }
 0x10c   : > { %v2317_v25 = vpop.eup %2316  ;;  %v1500_v28 = vadd.f32 %v2826_v60, %v1431_v18  ;;  %v1429_v29 = vmul.f32 %v2315_v21, %v2810_v50  ;;  %2338 = vpow2.f32 %v2076_v10  ;;  %v2893_v39 = vpop.f32.mrb[17].mxu0  ;;  %v1629_v10 = vld [vmem:[%s2851_s28 + $0x118] sm:$0xff] }
 0x10d   : > { %v2319_v31 = vpop.eup %2318  ;;  %v1532_v34 = vmul.f32 %v2309_v8, %v1468_v22  ;;  %v1466_v36 = vadd.f32 %v2826_v60, %v1397_v23  ;;  %v1400_v37 = vmul.f32 %v2317_v25, %v2810_v50  ;;  %2340 = vpow2.f32 %v2049_v11  ;;  %v2905_v47 = vpop.f32.mrb[17].mxu1 }
 0x10e   : > { %v2321_v32 = vpop.eup %2320  ;;  %v1564_v40 = vmul.f32 %v2311_v13, %v1500_v28  ;;  %v1498_v43 = vadd.f32 %v2826_v60, %v1429_v29  ;;  %v1432_v46 = vmul.f32 %v2319_v31, %v2810_v50  ;;  %v2907_v49 = vpop.f32.mrb[18].mxu0  ;;  %v1627_v29 = vld [vmem:[%s2851_s28 + $0x108] sm:$0xff] }
 0x10f   : > { %v2323_v51 = vpop.eup %2322  ;;  %v1660_v52 = vadd.f32 %v1596_v26, %v1532_v34  ;;  %v1530_v53 = vmul.f32 %v2313_v17, %v1466_v36  ;;  %v1469_v55 = vadd.f32 %v2826_v60, %v1400_v37  ;;  %v1398_v57 = vmul.f32 %v2321_v32, %v2810_v50  ;;  %v2912_v58 = vpop.f32.mrb[18].mxu1 }
 0x110   : > { %v2914_v59 = vpop.f32.mrb[19].mxu0  ;;  %v2325_v61 = vpop.eup %2324  ;;  %v1692_v0 = vadd.f32 %v1628_v35, %v1564_v40  ;;  %v1562_v1 = vmul.f32 %v2315_v21, %v1498_v43  ;;  %v1501_v3 = vadd.f32 %v2826_v60, %v1432_v46  ;;  %v1430_v4 = vmul.f32 %v2323_v51, %v2810_v50  ;;  %v1595_v21 = vld [vmem:[%s2851_s28 + $0x8] sm:$0xff]  ;;  %v1600_v40 = vld [vmem:[%s2851_s28 + $0x30] sm:$0xff] }
 0x111   : > { %v2919_v6 = vpop.f32.mrb[19].mxu1  ;;  %v2327_v7 = vpop.eup %2326  ;;  %1724 = vst [vmem:[%s2900_s7 + $0x10] sm:$0xff] %v1660_v52  ;;  %v1658_v8 = vadd.f32 %v1594_v42, %v1530_v53  ;;  %v1533_v9 = vmul.f32 %v2317_v25, %v1469_v55  ;;  %v1467_v11 = vadd.f32 %v2826_v60, %v1398_v57  ;;  %v1403_v13 = vmul.f32 %v2325_v61, %v2810_v50 }
 0x112   : > { %v2329_v15 = vpop.eup %2328  ;;  %1756 = vst [vmem:[%s2900_s7 + $0x110] sm:$0xff] %v1692_v0  ;;  %v1690_v17 = vadd.f32 %v1626_v54, %v1562_v1  ;;  %v1565_v18 = vmul.f32 %v2319_v31, %v1501_v3  ;;  %v1499_v22 = vadd.f32 %v2826_v60, %v1430_v4  ;;  %v1435_v23 = vmul.f32 %v2327_v7, %v2810_v50  ;;  %v2937_v46 = vpop.f32.mrb[20].mxu0  ;;  %v1632_v54 = vld [vmem:[%s2851_s28 + $0x130] sm:$0xff]  ;;  %v1598_v4 = vld [vmem:[%s2851_s28 + $0x20] sm:$0xff] }
 0x113   : > { %v2331_v26 = vpop.eup %2330  ;;  %1722 = vst [vmem:[%s2900_s7] sm:$0xff] %v1658_v8  ;;  %v1661_v25 = vadd.f32 %v1597_v2, %v1533_v9  ;;  %v1531_v28 = vmul.f32 %v2321_v32, %v1467_v11  ;;  %v1472_v34 = vadd.f32 %v2826_v60, %v1403_v13  ;;  %v1401_v35 = vmul.f32 %v2329_v15, %v2810_v50  ;;  %v2945_v0 = vpop.f32.mrb[21].mxu0 }
 0x114   : > { %v2333_v36 = vpop.eup %2332  ;;  %1754 = vst [vmem:[%s2900_s7 + $0x100] sm:$0xff] %v1690_v17  ;;  %v1693_v37 = vadd.f32 %v1629_v10, %v1565_v18  ;;  %v1563_v31 = vmul.f32 %v2323_v51, %v1499_v22  ;;  %v1504_v42 = vadd.f32 %v2826_v60, %v1435_v23  ;;  %v1433_v43 = vmul.f32 %v2331_v26, %v2810_v50  ;;  %v2943_v51 = vpop.f32.mrb[20].mxu1  ;;  %v1630_v18 = vld [vmem:[%s2851_s28 + $0x120] sm:$0xff] }
 0x115   : > { %v2335_v32 = vpop.eup %2334  ;;  %1725 = vst [vmem:[%s2900_s7 + $0x18] sm:$0xff] %v1661_v25  ;;  %v1659_v52 = vadd.f32 %v1595_v21, %v1531_v28  ;;  %v1536_v53 = vmul.f32 %v2325_v61, %v1472_v34  ;;  %v1470_v55 = vadd.f32 %v2826_v60, %v1401_v35  ;;  %v1404_v57 = vmul.f32 %v2333_v36, %v2810_v50  ;;  %v2950_v9 = vpop.f32.mrb[21].mxu1  ;;  %v1601_v34 = vld [vmem:[%s2851_s28 + $0x38] sm:$0xff] }
 0x116   : > { %v2337_v1 = vpop.eup %2336  ;;  %1757 = vst [vmem:[%s2900_s7 + $0x118] sm:$0xff] %v1693_v37  ;;  %v1691_v2 = vadd.f32 %v1627_v29, %v1563_v31  ;;  %v1568_v3 = vmul.f32 %v2327_v7, %v1504_v42  ;;  %v1502_v8 = vadd.f32 %v2826_v60, %v1433_v43  ;;  %v1239_v61 = vadd.f32 1.0, %v2335_v32  ;;  %v2952_v10 = vpop.f32.mrb[22].mxu0 }
 0x117   : > { %v2339_v11 = vpop.eup %2338  ;;  %1723 = vst [vmem:[%s2900_s7 + $0x8] sm:$0xff] %v1659_v52  ;;  %v1664_v13 = vadd.f32 %v1600_v40, %v1536_v53  ;;  %v1534_v17 = vmul.f32 %v2329_v15, %v1470_v55  ;;  %v1473_v21 = vadd.f32 %v2826_v60, %v1404_v57  ;;  %v1205_v22 = vadd.f32 1.0, %v2337_v1  ;;  %v2957_v7 = vpop.f32.mrb[22].mxu1 }
 0x118   : > { %v2959_v23 = vpop.f32.mrb[23].mxu0  ;;  %v2341_v25 = vpop.eup %2340  ;;  %1755 = vst [vmem:[%s2900_s7 + $0x108] sm:$0xff] %v1691_v2  ;;  %v1696_v28 = vadd.f32 %v1632_v54, %v1568_v3  ;;  %v1566_v29 = vmul.f32 %v2331_v26, %v1502_v8  ;;  %2342 = vrcp.f32 %v1239_v61  ;;  %v1237_v35 = vadd.f32 1.0, %v2339_v11 }
 0x119   : > { %v2963_v37 = vpop.f32.mrb[23].mxu1  ;;  %1728 = vst [vmem:[%s2900_s7 + $0x30] sm:$0xff] %v1664_v13  ;;  %v1662_v15 = vadd.f32 %v1598_v4, %v1534_v17  ;;  %v1537_v31 = vmul.f32 %v2333_v36, %v1473_v21  ;;  %2344 = vrcp.f32 %v1205_v22  ;;  %v1210_v40 = vadd.f32 1.0, %v2341_v25  ;;  %v1633_v21 = vld [vmem:[%s2851_s28 + $0x138] sm:$0xff] }
 0x11a   : > { %1760 = vst [vmem:[%s2900_s7 + $0x130] sm:$0xff] %v1696_v28  ;;  %v1694_v42 = vadd.f32 %v1630_v18, %v1566_v29  ;;  %2346 = vrcp.f32 %v1237_v35  ;;  %v2050_v43 = vmul.f32 -1.442695, %v2794_v41  ;;  %v2970_v26 = vadd.f32 %v2723_v33, %v2846_v12  ;;  %v2994_v53 = vpop.f32.mrb[24].mxu0  ;;  %v1599_v35 = vld [vmem:[%s2851_s28 + $0x28] sm:$0xff] }
 0x11b   : > { %1726 = vst [vmem:[%s2900_s7 + $0x20] sm:$0xff] %v1662_v15  ;;  %v1665_v32 = vadd.f32 %v1601_v34, %v1537_v31  ;;  %2348 = vrcp.f32 %v1210_v40  ;;  %v2975_v36 = vadd.f32 %v2886_v27, %v2723_v33  ;;  %v2979_v52 = vadd.f32 %v2891_v38, %v2723_v33  ;;  %v3007_v38 = vpop.f32.mrb[24].mxu1 }
 0x11c   : > { %1758 = vst [vmem:[%s2900_s7 + $0x120] sm:$0xff] %v1694_v42  ;;  %2350 = vpow2.f32 %v2855_v14  ;;  %v2082_v41 = vmul.f32 -1.442695, %v2797_v44  ;;  %989 = vst [vmem:[%s2730_s15 + $0x168] sm:$0xff] %v2970_v26  ;;  %v2988_v12 = vadd.f32 %v2723_v33, %v2893_v39  ;;  %v2992_v27 = vadd.f32 %v2723_v33, %v2905_v47  ;;  %v3009_v39 = vpop.f32.mrb[25].mxu0  ;;  %v3021_v47 = vpop.f32.mrb[25].mxu1 }
 0x11d   : > { %1729 = vst [vmem:[%s2900_s7 + $0x38] sm:$0xff] %v1665_v32  ;;  %2352 = vpow2.f32 %v2872_v24  ;;  %v2048_v14 = vmul.f32 -1.442695, %v2800_v45  ;;  %962 = vst [vmem:[%s2730_s15 + $0x90] sm:$0xff] %v2975_v36  ;;  %v3005_v44 = vadd.f32 %v2907_v49, %v2723_v33  ;;  %v2080_v24 = vmul.f32 -1.442695, %v2805_v48 }
 0x11e   : > { %994 = vst [vmem:[%s2730_s15 + $0x190] sm:$0xff] %v2979_v52  ;;  %2354 = vpow2.f32 %v2880_v30  ;;  %960 = vst [vmem:[%s2730_s15 + $0x80] sm:$0xff] %v2988_v12  ;;  %v3019_v45 = vadd.f32 %v2912_v58, %v2723_v33  ;;  %v3023_v49 = vpop.f32.mrb[26].mxu0  ;;  %v2053_v30 = vmul.f32 -1.442695, %v2820_v56  ;;  %v3030_v48 = vadd.f32 %v2723_v33, %v2914_v59  ;;  %v3036_v58 = vpop.f32.mrb[26].mxu1 }
 0x11f   : > { %992 = vst [vmem:[%s2730_s15 + $0x180] sm:$0xff] %v2992_v27  ;;  %2356 = vpow2.f32 %v2050_v43  ;;  %963 = vst [vmem:[%s2730_s15 + $0x98] sm:$0xff] %v3005_v44  ;;  %v3034_v54 = vadd.f32 %v2723_v33, %v2919_v6  ;;  %v3038_v55 = vpop.f32.mrb[27].mxu0  ;;  %v2085_v57 = vmul.f32 -1.442695, %v2829_v62  ;;  %v3045_v56 = vadd.f32 %v2937_v46, %v2723_v33  ;;  %v3051_v6 = vpop.f32.mrb[27].mxu1 }
 0x120   : > { %2358 = vpow2.f32 %v2082_v41  ;;  %995 = vst [vmem:[%s2730_s15 + $0x198] sm:$0xff] %v3019_v45  ;;  %v3049_v59 = vadd.f32 %v2943_v51, %v2723_v33  ;;  %v2051_v1 = vmul.f32 -1.442695, %v2832_v63  ;;  %961 = vst [vmem:[%s2730_s15 + $0x88] sm:$0xff] %v3030_v48  ;;  %v3060_v62 = vadd.f32 %v2723_v33, %v2945_v0  ;;  %v1631_v41 = vld [vmem:[%s2851_s28 + $0x128] sm:$0xff] }
 0x121   : > { %2360 = vpow2.f32 %v2048_v14  ;;  %993 = vst [vmem:[%s2730_s15 + $0x188] sm:$0xff] %v3034_v54  ;;  %v2083_v51 = vmul.f32 -1.442695, %v2838_v5  ;;  %966 = vst [vmem:[%s2730_s15 + $0xb0] sm:$0xff] %v3045_v56  ;;  %v3069_v63 = vadd.f32 %v2723_v33, %v2950_v9  ;;  %v2054_v0 = vmul.f32 -1.442695, %v2860_v16 }
 0x122   : > { %v2343_v46 = vpop.eup %2342  ;;  %2362 = vpow2.f32 %v2080_v24  ;;  %998 = vst [vmem:[%s2730_s15 + $0x1b0] sm:$0xff] %v3049_v59  ;;  %964 = vst [vmem:[%s2730_s15 + $0xa0] sm:$0xff] %v3060_v62  ;;  %v3077_v5 = vadd.f32 %v2952_v10, %v2723_v33  ;;  %v2086_v61 = vmul.f32 -1.442695, %v2864_v19  ;;  %v3085_v9 = vadd.f32 %v2957_v7, %v2723_v33  ;;  %v3087_v16 = vpop.f32.mrb[28].mxu0 }
 0x123   : > { %v2345_v2 = vpop.eup %2344  ;;  %v1436_v3 = vmul.f32 %v2343_v46, %v2810_v50  ;;  %2364 = vpow2.f32 %v2053_v30  ;;  %996 = vst [vmem:[%s2730_s15 + $0x1a0] sm:$0xff] %v3069_v63  ;;  %v3093_v17 = vpop.f32.mrb[28].mxu1 }
 0x124   : > { %v2347_v4 = vpop.eup %2346  ;;  %v1402_v8 = vmul.f32 %v2345_v2, %v2810_v50  ;;  %2366 = vpow2.f32 %v2085_v57  ;;  %967 = vst [vmem:[%s2730_s15 + $0xb8] sm:$0xff] %v3077_v5  ;;  %v3095_v19 = vpop.f32.mrb[29].mxu0  ;;  %999 = vst [vmem:[%s2730_s15 + $0x1b8] sm:$0xff] %v3085_v9 }
 0x125   : > { %v2349_v11 = vpop.eup %2348  ;;  %v1505_v10 = vadd.f32 %v2826_v60, %v1436_v3  ;;  %v1434_v13 = vmul.f32 %v2347_v4, %v2810_v50  ;;  %2368 = vpow2.f32 %v2051_v1  ;;  %v3102_v25 = vpop.f32.mrb[29].mxu1 }
 0x126   : > { %v2351_v18 = vpop.eup %2350  ;;  %v1471_v22 = vadd.f32 %v2826_v60, %v1402_v8  ;;  %v1407_v7 = vmul.f32 %v2349_v11, %v2810_v50  ;;  %2370 = vpow2.f32 %v2083_v51  ;;  %v3104_v28 = vpop.f32.mrb[30].mxu0  ;;  %v1604_v51 = vld [vmem:[%s2851_s28 + $0x50] sm:$0xff] }
 0x127   : > { %v2353_v29 = vpop.eup %2352  ;;  %v1569_v34 = vmul.f32 %v2343_v46, %v1505_v10  ;;  %v1503_v15 = vadd.f32 %v2826_v60, %v1434_v13  ;;  %v1242_v31 = vadd.f32 1.0, %v2351_v18  ;;  %2372 = vpow2.f32 %v2054_v0  ;;  %v3108_v40 = vpop.f32.mrb[30].mxu1 }
 0x128   : > { %v3110_v42 = vpop.f32.mrb[31].mxu0  ;;  %v2355_v43 = vpop.eup %2354  ;;  %v1535_v32 = vmul.f32 %v2345_v2, %v1471_v22  ;;  %v1476_v14 = vadd.f32 %v2826_v60, %v1407_v7  ;;  %v1208_v24 = vadd.f32 1.0, %v2353_v29  ;;  %2374 = vpow2.f32 %v2086_v61 }
 0x129   : > { %v3114_v30 = vpop.f32.mrb[31].mxu1  ;;  %v2357_v57 = vpop.eup %2356  ;;  %v1697_v1 = vadd.f32 %v1633_v21, %v1569_v34  ;;  %v1567_v46 = vmul.f32 %v2347_v4, %v1503_v15  ;;  %2376 = vrcp.f32 %v1242_v31  ;;  %v1240_v3 = vadd.f32 1.0, %v2355_v43 }
 0x12a   : > { %v2359_v0 = vpop.eup %2358  ;;  %v1663_v8 = vadd.f32 %v1599_v35, %v1535_v32  ;;  %v1540_v10 = vmul.f32 %v2349_v11, %v1476_v14  ;;  %2378 = vrcp.f32 %v1208_v24  ;;  %v1211_v2 = vadd.f32 1.0, %v2357_v57 }
 0x12b   : > { %v2361_v13 = vpop.eup %2360  ;;  %1761 = vst [vmem:[%s2900_s7 + $0x138] sm:$0xff] %v1697_v1  ;;  %v1695_v18 = vadd.f32 %v1631_v41, %v1567_v46  ;;  %2380 = vrcp.f32 %v1240_v3  ;;  %v1243_v61 = vadd.f32 1.0, %v2359_v0  ;;  %v3120_v4 = vadd.f32 %v2723_v33, %v2959_v23 }
 0x12c   : > { %v2363_v21 = vpop.eup %2362  ;;  %1727 = vst [vmem:[%s2900_s7 + $0x28] sm:$0xff] %v1663_v8  ;;  %v1668_v22 = vadd.f32 %v1604_v51, %v1540_v10  ;;  %2382 = vrcp.f32 %v1211_v2  ;;  %v1209_v11 = vadd.f32 1.0, %v2361_v13  ;;  %v3125_v7 = vadd.f32 %v2723_v33, %v2963_v37 }
 0x12d   : > { %v2365_v29 = vpop.eup %2364  ;;  %1759 = vst [vmem:[%s2900_s7 + $0x128] sm:$0xff] %v1695_v18  ;;  %2384 = vrcp.f32 %v1243_v61  ;;  %v1241_v34 = vadd.f32 1.0, %v2363_v21  ;;  %965 = vst [vmem:[%s2730_s15 + $0xa8] sm:$0xff] %v3120_v4  ;;  %v3132_v23 = vadd.f32 %v2994_v53, %v2723_v33  ;;  %v3139_v37 = vadd.f32 %v3007_v38, %v2723_v33  ;;  %v1636_v21 = vld [vmem:[%s2851_s28 + $0x150] sm:$0xff] }
 0x12e   : > { %v2367_v35 = vpop.eup %2366  ;;  %1732 = vst [vmem:[%s2900_s7 + $0x50] sm:$0xff] %v1668_v22  ;;  %2386 = vrcp.f32 %v1209_v11  ;;  %v1214_v15 = vadd.f32 1.0, %v2365_v29  ;;  %997 = vst [vmem:[%s2730_s15 + $0x1a8] sm:$0xff] %v3125_v7  ;;  %v3145_v53 = vadd.f32 %v2723_v33, %v3009_v39  ;;  %v2052_v14 = vmul.f32 -1.442695, %v2867_v20 }
 0x12f   : > { %v2369_v31 = vpop.eup %2368  ;;  %2388 = vrcp.f32 %v1241_v34  ;;  %v1246_v43 = vadd.f32 1.0, %v2367_v35  ;;  %970 = vst [vmem:[%s2730_s15 + $0xd0] sm:$0xff] %v3132_v23  ;;  %1002 = vst [vmem:[%s2730_s15 + $0x1d0] sm:$0xff] %v3139_v37  ;;  %v3152_v38 = vadd.f32 %v2723_v33, %v3021_v47  ;;  %v2084_v1 = vmul.f32 -1.442695, %v2970_v26 }
 0x130   : > { %v2371_v32 = vpop.eup %2370  ;;  %2390 = vrcp.f32 %v1214_v15  ;;  %v1212_v41 = vadd.f32 1.0, %v2369_v31  ;;  %968 = vst [vmem:[%s2730_s15 + $0xc0] sm:$0xff] %v3145_v53  ;;  %v3159_v39 = vadd.f32 %v3023_v49, %v2723_v33  ;;  %v2057_v51 = vmul.f32 -1.442695, %v2975_v36 }
 0x131   : > { %v2373_v24 = vpop.eup %2372  ;;  %2392 = vrcp.f32 %v1246_v43  ;;  %v1244_v57 = vadd.f32 1.0, %v2371_v32  ;;  %1000 = vst [vmem:[%s2730_s15 + $0x1c0] sm:$0xff] %v3152_v38  ;;  %v3166_v47 = vadd.f32 %v3036_v58, %v2723_v33  ;;  %v2089_v0 = vmul.f32 -1.442695, %v2979_v52  ;;  %v1634_v43 = vld [vmem:[%s2851_s28 + $0x140] sm:$0xff] }
 0x132   : > { %v2375_v46 = vpop.eup %2374  ;;  %2394 = vrcp.f32 %v1212_v41  ;;  %v1215_v20 = vadd.f32 1.0, %v2373_v24  ;;  %971 = vst [vmem:[%s2730_s15 + $0xd8] sm:$0xff] %v3159_v39  ;;  %v3173_v49 = vadd.f32 %v2723_v33, %v3038_v55  ;;  %v3177_v58 = vmul.f32 -1.442695, %v2988_v12 }
 0x133   : > { %v2377_v3 = vpop.eup %2376  ;;  %2396 = vrcp.f32 %v1244_v57  ;;  %v1247_v26 = vadd.f32 1.0, %v2375_v46  ;;  %1003 = vst [vmem:[%s2730_s15 + $0x1d8] sm:$0xff] %v3166_v47  ;;  %v3183_v52 = vadd.f32 %v2723_v33, %v3051_v6  ;;  %v3187_v55 = vmul.f32 -1.442695, %v2992_v27  ;;  %v1605_v57 = vld [vmem:[%s2851_s28 + $0x58] sm:$0xff] }
 0x134   : > { %v2379_v8 = vpop.eup %2378  ;;  %v1439_v36 = vmul.f32 %v2377_v3, %v2810_v50  ;;  %2398 = vrcp.f32 %v1215_v20  ;;  %969 = vst [vmem:[%s2730_s15 + $0xc8] sm:$0xff] %v3173_v49  ;;  %v3193_v12 = vadd.f32 %v3087_v16, %v2723_v33  ;;  %v3198_v61 = vmul.f32 -1.442695, %v3005_v44  ;;  %v1602_v44 = vld [vmem:[%s2851_s28 + $0x40] sm:$0xff] }
 0x135   : > { %v2381_v10 = vpop.eup %2380  ;;  %v1405_v2 = vmul.f32 %v2379_v8, %v2810_v50  ;;  %2400 = vrcp.f32 %v1247_v26  ;;  %1001 = vst [vmem:[%s2730_s15 + $0x1c8] sm:$0xff] %v3183_v52  ;;  %v3206_v16 = vmul.f32 -1.442695, %v3019_v45  ;;  %v1637_v26 = vld [vmem:[%s2851_s28 + $0x158] sm:$0xff] }
 0x136   : > { %v2383_v13 = vpop.eup %2382  ;;  %v1508_v18 = vadd.f32 %v2826_v60, %v1439_v36  ;;  %v1437_v6 = vmul.f32 %v2381_v10, %v2810_v50  ;;  %2402 = vpow2.f32 %v2052_v14  ;;  %974 = vst [vmem:[%s2730_s15 + $0xf0] sm:$0xff] %v3193_v12 }
 0x137   : > { %v2385_v27 = vpop.eup %2384  ;;  %v1474_v22 = vadd.f32 %v2826_v60, %v1405_v2  ;;  %v1408_v33 = vmul.f32 %v2383_v13, %v2810_v50  ;;  %2404 = vpow2.f32 %v2084_v1 }
 0x138   : > { %v2387_v11 = vpop.eup %2386  ;;  %v1572_v29 = vmul.f32 %v2377_v3, %v1508_v18  ;;  %v1506_v34 = vadd.f32 %v2826_v60, %v1437_v6  ;;  %v1440_v35 = vmul.f32 %v2385_v27, %v2810_v50  ;;  %2406 = vpow2.f32 %v2057_v51  ;;  %v1603_v18 = vld [vmem:[%s2851_s28 + $0x48] sm:$0xff] }
 0x139   : > { %v2389_v15 = vpop.eup %2388  ;;  %v1538_v31 = vmul.f32 %v2379_v8, %v1474_v22  ;;  %v1477_v32 = vadd.f32 %v2826_v60, %v1408_v33  ;;  %v1406_v45 = vmul.f32 %v2387_v11, %v2810_v50  ;;  %2408 = vpow2.f32 %v2089_v0 }
 0x13a   : > { %v2391_v41 = vpop.eup %2390  ;;  %v1700_v14 = vadd.f32 %v1636_v21, %v1572_v29  ;;  %v1570_v24 = vmul.f32 %v2381_v10, %v1506_v34  ;;  %v1509_v1 = vadd.f32 %v2826_v60, %v1440_v35  ;;  %v1438_v46 = vmul.f32 %v2389_v15, %v2810_v50  ;;  %v1635_v29 = vld [vmem:[%s2851_s28 + $0x148] sm:$0xff] }
 0x13b   : > { %v2393_v20 = vpop.eup %2392  ;;  %v1666_v51 = vadd.f32 %v1602_v44, %v1538_v31  ;;  %v1541_v3 = vmul.f32 %v2383_v13, %v1477_v32  ;;  %v1475_v8 = vadd.f32 %v2826_v60, %v1406_v45  ;;  %v1411_v36 = vmul.f32 %v2391_v41, %v2810_v50 }
 0x13c   : > { %v2395_v0 = vpop.eup %2394  ;;  %1764 = vst [vmem:[%s2900_s7 + $0x150] sm:$0xff] %v1700_v14  ;;  %v1698_v2 = vadd.f32 %v1634_v43, %v1570_v24  ;;  %v1573_v10 = vmul.f32 %v2385_v27, %v1509_v1  ;;  %v1507_v6 = vadd.f32 %v2826_v60, %v1438_v46  ;;  %v1443_v21 = vmul.f32 %v2393_v20, %v2810_v50  ;;  %v1608_v43 = vld [vmem:[%s2851_s28 + $0x70] sm:$0xff] }
 0x13d   : > { %v2397_v22 = vpop.eup %2396  ;;  %1730 = vst [vmem:[%s2900_s7 + $0x40] sm:$0xff] %v1666_v51  ;;  %v1669_v13 = vadd.f32 %v1605_v57, %v1541_v3  ;;  %v1539_v33 = vmul.f32 %v2387_v11, %v1475_v8  ;;  %v1480_v44 = vadd.f32 %v2826_v60, %v1411_v36  ;;  %v1409_v34 = vmul.f32 %v2395_v0, %v2810_v50  ;;  %v1640_v57 = vld [vmem:[%s2851_s28 + $0x170] sm:$0xff] }
 0x13e   : > { %v2399_v35 = vpop.eup %2398  ;;  %1762 = vst [vmem:[%s2900_s7 + $0x140] sm:$0xff] %v1698_v2  ;;  %v1701_v27 = vadd.f32 %v1637_v26, %v1573_v10  ;;  %v1571_v31 = vmul.f32 %v2389_v15, %v1507_v6  ;;  %v1512_v32 = vadd.f32 %v2826_v60, %v1443_v21  ;;  %v1441_v45 = vmul.f32 %v2397_v22, %v2810_v50  ;;  %v1606_v26 = vld [vmem:[%s2851_s28 + $0x60] sm:$0xff] }
 0x13f   : > { %v2401_v14 = vpop.eup %2400  ;;  %1733 = vst [vmem:[%s2900_s7 + $0x58] sm:$0xff] %v1669_v13  ;;  %v1667_v11 = vadd.f32 %v1603_v18, %v1539_v33  ;;  %v1544_v24 = vmul.f32 %v2391_v41, %v1480_v44  ;;  %v1478_v1 = vadd.f32 %v2826_v60, %v1409_v34  ;;  %v1412_v46 = vmul.f32 %v2399_v35, %v2810_v50  ;;  %v1638_v18 = vld [vmem:[%s2851_s28 + $0x160] sm:$0xff] }
 0x140   : > { %v2403_v51 = vpop.eup %2402  ;;  %1765 = vst [vmem:[%s2900_s7 + $0x158] sm:$0xff] %v1701_v27  ;;  %v1699_v15 = vadd.f32 %v1635_v29, %v1571_v31  ;;  %v1576_v3 = vmul.f32 %v2393_v20, %v1512_v32  ;;  %v1510_v8 = vadd.f32 %v2826_v60, %v1441_v45  ;;  %v1444_v36 = vmul.f32 %v2401_v14, %v2810_v50  ;;  %v1609_v29 = vld [vmem:[%s2851_s28 + $0x78] sm:$0xff] }
 0x141   : > { %v2405_v2 = vpop.eup %2404  ;;  %1731 = vst [vmem:[%s2900_s7 + $0x48] sm:$0xff] %v1667_v11  ;;  %v1672_v41 = vadd.f32 %v1608_v43, %v1544_v24  ;;  %v1542_v10 = vmul.f32 %v2395_v0, %v1478_v1  ;;  %v1481_v6 = vadd.f32 %v2826_v60, %v1412_v46  ;;  %v1213_v21 = vadd.f32 1.0, %v2403_v51  ;;  %v1641_v0 = vld [vmem:[%s2851_s28 + $0x178] sm:$0xff] }
 0x142   : > { %v2407_v13 = vpop.eup %2406  ;;  %1763 = vst [vmem:[%s2900_s7 + $0x148] sm:$0xff] %v1699_v15  ;;  %v1704_v33 = vadd.f32 %v1640_v57, %v1576_v3  ;;  %v1574_v20 = vmul.f32 %v2397_v22, %v1510_v8  ;;  %v1513_v44 = vadd.f32 %v2826_v60, %v1444_v36  ;;  %v1245_v34 = vadd.f32 1.0, %v2405_v2  ;;  %v2538_v57 = vld [vmem:[%s3492_s2] ss:$0 sm:$0xff]  ;;  %v1607_v8 = vld [vmem:[%s2851_s28 + $0x68] sm:$0xff] }
 0x143   : > { %v2409_v27 = vpop.eup %2408  ;;  %1736 = vst [vmem:[%s2900_s7 + $0x70] sm:$0xff] %v1672_v41  ;;  %v1670_v31 = vadd.f32 %v1606_v26, %v1542_v10  ;;  %v1545_v43 = vmul.f32 %v2399_v35, %v1481_v6  ;;  %2410 = vrcp.f32 %v1213_v21  ;;  %v1218_v32 = vadd.f32 1.0, %v2407_v13  ;;  %v1639_v10 = vld [vmem:[%s2851_s28 + $0x168] sm:$0xff]  ;;  %v1612_v13 = vld [vmem:[%s2851_s28 + $0x90] sm:$0xff] }
 0x144   : > { %1768 = vst [vmem:[%s2900_s7 + $0x170] sm:$0xff] %v1704_v33  ;;  %v1702_v45 = vadd.f32 %v1638_v18, %v1574_v20  ;;  %v1577_v11 = vmul.f32 %v2401_v14, %v1513_v44  ;;  %2412 = vrcp.f32 %v1245_v34  ;;  %v1250_v22 = vadd.f32 1.0, %v2409_v27  ;;  %v1644_v34 = vld [vmem:[%s2851_s28 + $0x190] sm:$0xff] }
 0x145   : > { %1734 = vst [vmem:[%s2900_s7 + $0x60] sm:$0xff] %v1670_v31  ;;  %v1673_v24 = vadd.f32 %v1609_v29, %v1545_v43  ;;  %2414 = vrcp.f32 %v1218_v32  ;;  %v3256_v35 = vadd.f32 %v2538_v57, %v3093_v17  ;;  %v3259_v1 = vadd.f32 %v2538_v57, %v3095_v19 }
 0x146   : > { %1766 = vst [vmem:[%s2900_s7 + $0x160] sm:$0xff] %v1702_v45  ;;  %v1705_v14 = vadd.f32 %v1641_v0, %v1577_v11  ;;  %2416 = vrcp.f32 %v1250_v22  ;;  %v3263_v46 = vadd.f32 %v2538_v57, %v3102_v25  ;;  %v3266_v51 = vadd.f32 %v2538_v57, %v3104_v28 }
 0x147   : > { %1737 = vst [vmem:[%s2900_s7 + $0x78] sm:$0xff] %v1673_v24  ;;  %2418 = vpow2.f32 %v3177_v58  ;;  %v2056_v17 = vmul.f32 -1.442695, %v3030_v48  ;;  %1006 = vst [vmem:[%s2730_s15 + $0x1f0] sm:$0xff] %v3256_v35  ;;  %v3276_v19 = vadd.f32 %v2538_v57, %v3108_v40  ;;  %v2088_v25 = vmul.f32 -1.442695, %v3034_v54 }
 0x148   : > { %972 = vst [vmem:[%s2730_s15 + $0xe0] sm:$0xff] %v3259_v1  ;;  %1769 = vst [vmem:[%s2900_s7 + $0x178] sm:$0xff] %v1705_v14  ;;  %2420 = vpow2.f32 %v3187_v55  ;;  %v3286_v48 = vadd.f32 %v2538_v57, %v3110_v42  ;;  %v2061_v28 = vmul.f32 -1.442695, %v3045_v56  ;;  %v3293_v40 = vadd.f32 %v2538_v57, %v3114_v30 }
 0x149   : > { %1004 = vst [vmem:[%s2730_s15 + $0x1e0] sm:$0xff] %v3263_v46  ;;  %975 = vst [vmem:[%s2730_s15 + $0xf8] sm:$0xff] %v3266_v51  ;;  %2422 = vpow2.f32 %v3198_v61  ;;  %v2093_v54 = vmul.f32 -1.442695, %v3049_v59  ;;  %v2059_v58 = vmul.f32 -1.442695, %v3060_v62 }
 0x14a   : > { %1007 = vst [vmem:[%s2730_s15 + $0x1f8] sm:$0xff] %v3276_v19  ;;  %2424 = vpow2.f32 %v3206_v16  ;;  %973 = vst [vmem:[%s2730_s15 + $0xe8] sm:$0xff] %v3286_v48  ;;  %v2091_v42 = vmul.f32 -1.442695, %v3069_v63  ;;  %v2062_v30 = vmul.f32 -1.442695, %v3077_v5 }
 0x14b   : > { %2426 = vpow2.f32 %v2056_v17  ;;  %1005 = vst [vmem:[%s2730_s15 + $0x1e8] sm:$0xff] %v3293_v40  ;;  %v2094_v59 = vmul.f32 -1.442695, %v3085_v9  ;;  %v2060_v15 = vmul.f32 -1.442695, %v3120_v4 }
 0x14c   : > { %2428 = vpow2.f32 %v2088_v25 }
 0x14d   : > { %v2411_v56 = vpop.eup %2410  ;;  %2430 = vpow2.f32 %v2061_v28 }
 0x14e   : > { %v2413_v55 = vpop.eup %2412  ;;  %v1410_v61 = vmul.f32 %v2411_v56, %v2810_v50  ;;  %2432 = vpow2.f32 %v2093_v54 }
 0x14f   : > { %v2415_v16 = vpop.eup %2414  ;;  %v1442_v62 = vmul.f32 %v2413_v55, %v2810_v50  ;;  %2434 = vpow2.f32 %v2059_v58 }
 0x150   : > { %v2417_v3 = vpop.eup %2416  ;;  %v1479_v63 = vadd.f32 %v2826_v60, %v1410_v61  ;;  %v1415_v26 = vmul.f32 %v2415_v16, %v2810_v50  ;;  %2436 = vpow2.f32 %v2091_v42 }
 0x151   : > { %v2419_v5 = vpop.eup %2418  ;;  %v1511_v36 = vadd.f32 %v2826_v60, %v1442_v62  ;;  %v1447_v9 = vmul.f32 %v2417_v3, %v2810_v50  ;;  %2438 = vpow2.f32 %v2062_v30 }
 0x152   : > { %v2421_v2 = vpop.eup %2420  ;;  %v1543_v41 = vmul.f32 %v2411_v56, %v1479_v63  ;;  %v1484_v4 = vadd.f32 %v2826_v60, %v1415_v26  ;;  %v1216_v18 = vadd.f32 1.0, %v2419_v5  ;;  %2440 = vpow2.f32 %v2094_v59  ;;  %v3327_v26 = vld [vmem:[%s3492_s2 + $0x2] ss:$0 sm:$0xff] }
 0x153   : > { %v2423_v6 = vpop.eup %2422  ;;  %v1575_v21 = vmul.f32 %v2413_v55, %v1511_v36  ;;  %v1516_v33 = vadd.f32 %v2826_v60, %v1447_v9  ;;  %v1248_v20 = vadd.f32 1.0, %v2421_v2  ;;  %2442 = vpow2.f32 %v2060_v15  ;;  %v3336_v2 = vld [vmem:[%s3492_s2 + $0x1] ss:$0 sm:$0xff] }
 0x154   : > { %v2425_v29 = vpop.eup %2424  ;;  %v1671_v44 = vadd.f32 %v1607_v8, %v1543_v41  ;;  %v1548_v50 = vmul.f32 %v2415_v16, %v1484_v4  ;;  %2444 = vrcp.f32 %v1216_v18  ;;  %v1219_v27 = vadd.f32 1.0, %v2423_v6  ;;  %v1610_v18 = vld [vmem:[%s2851_s28 + $0x80] sm:$0xff] }
 0x155   : > { %v2427_v31 = vpop.eup %2426  ;;  %v1703_v43 = vadd.f32 %v1639_v10, %v1575_v21  ;;  %v1580_v0 = vmul.f32 %v2417_v3, %v1516_v33  ;;  %2446 = vrcp.f32 %v1248_v20  ;;  %v1251_v32 = vadd.f32 1.0, %v2425_v29  ;;  %v1642_v20 = vld [vmem:[%s2851_s28 + $0x180] sm:$0xff] }
 0x156   : > { %v2429_v45 = vpop.eup %2428  ;;  %1735 = vst [vmem:[%s2900_s7 + $0x68] sm:$0xff] %v1671_v44  ;;  %v1676_v11 = vadd.f32 %v1612_v13, %v1548_v50  ;;  %2448 = vrcp.f32 %v1219_v27  ;;  %v1217_v60 = vadd.f32 1.0, %v2427_v31  ;;  %v2092_v16 = vmul.f32 -1.442695, %v3125_v7 }
 0x157   : > { %v2431_v22 = vpop.eup %2430  ;;  %1767 = vst [vmem:[%s2900_s7 + $0x168] sm:$0xff] %v1703_v43  ;;  %v1708_v24 = vadd.f32 %v1644_v34, %v1580_v0  ;;  %2450 = vrcp.f32 %v1251_v32  ;;  %v1249_v57 = vadd.f32 1.0, %v2429_v45  ;;  %v2065_v3 = vmul.f32 -1.442695, %v3132_v23  ;;  %v1613_v34 = vld [vmem:[%s2851_s28 + $0x98] sm:$0xff] }
 0x158   : > { %v2433_v14 = vpop.eup %2432  ;;  %1740 = vst [vmem:[%s2900_s7 + $0x90] sm:$0xff] %v1676_v11  ;;  %2452 = vrcp.f32 %v1217_v60  ;;  %v1222_v17 = vadd.f32 1.0, %v2431_v22  ;;  %v2097_v8 = vmul.f32 -1.442695, %v3139_v37  ;;  %v2063_v9 = vmul.f32 -1.442695, %v3145_v53 }
 0x159   : > { %v2435_v25 = vpop.eup %2434  ;;  %1772 = vst [vmem:[%s2900_s7 + $0x190] sm:$0xff] %v1708_v24  ;;  %2454 = vrcp.f32 %v1249_v57  ;;  %v1254_v28 = vadd.f32 1.0, %v2433_v14  ;;  %v3341_v37 = vmul.f32 -1.442695, %v3152_v38  ;;  %v3347_v21 = vmul.f32 -1.442695, %v3159_v39 }
 0x15a   : > { %v2437_v54 = vpop.eup %2436  ;;  %2456 = vrcp.f32 %v1222_v17  ;;  %v1220_v58 = vadd.f32 1.0, %v2435_v25  ;;  %v1645_v32 = vld [vmem:[%s2851_s28 + $0x198] sm:$0xff]  ;;  %v1611_v57 = vld [vmem:[%s2851_s28 + $0x88] sm:$0xff] }
 0x15b   : > { %v2439_v42 = vpop.eup %2438  ;;  %2458 = vrcp.f32 %v1254_v28  ;;  %v1252_v56 = vadd.f32 1.0, %v2437_v54 }
 0x15c   : > { %v2441_v30 = vpop.eup %2440  ;;  %2460 = vrcp.f32 %v1220_v58  ;;  %v1223_v55 = vadd.f32 1.0, %v2439_v42  ;;  %v1643_v58 = vld [vmem:[%s2851_s28 + $0x188] sm:$0xff] }
 0x15d   : > { %v2443_v61 = vpop.eup %2442  ;;  %2462 = vrcp.f32 %v1252_v56  ;;  %v1255_v59 = vadd.f32 1.0, %v2441_v30 }
 0x15e   : > { %v2445_v62 = vpop.eup %2444  ;;  %2464 = vrcp.f32 %v1223_v55  ;;  %v1221_v15 = vadd.f32 1.0, %v2443_v61 }
 0x15f   : > { %v2447_v63 = vpop.eup %2446  ;;  %v1413_v5 = vmul.f32 %v3327_v26, %v2445_v62  ;;  %2466 = vrcp.f32 %v1255_v59  ;;  %v1616_v59 = vld [vmem:[%s2851_s28 + $0xb0] sm:$0xff] }
 0x160   : > { %v2449_v36 = vpop.eup %2448  ;;  %v1445_v7 = vmul.f32 %v3327_v26, %v2447_v63  ;;  %2468 = vrcp.f32 %v1221_v15 }
 0x161   : > { %v2451_v23 = vpop.eup %2450  ;;  %v1482_v41 = vadd.f32 %v3336_v2, %v1413_v5  ;;  %v1416_v10 = vmul.f32 %v3327_v26, %v2449_v36  ;;  %2470 = vpow2.f32 %v2092_v16  ;;  %v1648_v5 = vld [vmem:[%s2851_s28 + $0x1b0] sm:$0xff] }
 0x162   : > { %v2453_v4 = vpop.eup %2452  ;;  %v1514_v6 = vadd.f32 %v3336_v2, %v1445_v7  ;;  %v1448_v53 = vmul.f32 %v3327_v26, %v2451_v23  ;;  %2472 = vpow2.f32 %v2065_v3 }
 0x163   : > { %v2455_v13 = vpop.eup %2454  ;;  %v1546_v33 = vmul.f32 %v2445_v62, %v1482_v41  ;;  %v1485_v29 = vadd.f32 %v3336_v2, %v1416_v10  ;;  %v1414_v44 = vmul.f32 %v3327_v26, %v2453_v4  ;;  %2474 = vpow2.f32 %v2097_v8  ;;  %v1614_v41 = vld [vmem:[%s2851_s28 + $0xa0] sm:$0xff] }
 0x164   : > { %v2457_v38 = vpop.eup %2456  ;;  %v1578_v50 = vmul.f32 %v2447_v63, %v1514_v6  ;;  %v1517_v27 = vadd.f32 %v3336_v2, %v1448_v53  ;;  %v1446_v31 = vmul.f32 %v3327_v26, %v2455_v13  ;;  %2476 = vpow2.f32 %v2063_v9 }
 0x165   : > { %v2459_v39 = vpop.eup %2458  ;;  %v1674_v43 = vadd.f32 %v1610_v18, %v1546_v33  ;;  %v1549_v0 = vmul.f32 %v2449_v36, %v1485_v29  ;;  %v1483_v45 = vadd.f32 %v3336_v2, %v1414_v44  ;;  %v1419_v11 = vmul.f32 %v3327_v26, %v2457_v38 }
 0x166   : > { %v2461_v60 = vpop.eup %2460  ;;  %v1706_v22 = vadd.f32 %v1642_v20, %v1578_v50  ;;  %v1581_v24 = vmul.f32 %v2451_v23, %v1517_v27  ;;  %v1515_v14 = vadd.f32 %v3336_v2, %v1446_v31  ;;  %v1451_v17 = vmul.f32 %v3327_v26, %v2459_v39  ;;  %v1617_v50 = vld [vmem:[%s2851_s28 + $0xb8] sm:$0xff] }
 0x167   : > { %v2463_v25 = vpop.eup %2462  ;;  %1738 = vst [vmem:[%s2900_s7 + $0x80] sm:$0xff] %v1674_v43  ;;  %v1677_v28 = vadd.f32 %v1613_v34, %v1549_v0  ;;  %v1547_v54 = vmul.f32 %v2453_v4, %v1483_v45  ;;  %v1488_v42 = vadd.f32 %v3336_v2, %v1419_v11  ;;  %v1417_v56 = vmul.f32 %v3327_v26, %v2461_v60  ;;  %v1649_v0 = vld [vmem:[%s2851_s28 + $0x1b8] sm:$0xff] }
 0x168   : > { %v2465_v30 = vpop.eup %2464  ;;  %1770 = vst [vmem:[%s2900_s7 + $0x180] sm:$0xff] %v1706_v22  ;;  %v1709_v55 = vadd.f32 %v1645_v32, %v1581_v24  ;;  %v1579_v61 = vmul.f32 %v2455_v13, %v1515_v14  ;;  %v1520_v16 = vadd.f32 %v3336_v2, %v1451_v17  ;;  %v1449_v62 = vmul.f32 %v3327_v26, %v2463_v25  ;;  %v1646_v13 = vld [vmem:[%s2851_s28 + $0x1a0] sm:$0xff]  ;;  %v1615_v24 = vld [vmem:[%s2851_s28 + $0xa8] sm:$0xff] }
 0x169   : > { %v2467_v15 = vpop.eup %2466  ;;  %1741 = vst [vmem:[%s2900_s7 + $0x98] sm:$0xff] %v1677_v28  ;;  %v1675_v3 = vadd.f32 %v1611_v57, %v1547_v54  ;;  %v1552_v63 = vmul.f32 %v2457_v38, %v1488_v42  ;;  %v1486_v8 = vadd.f32 %v3336_v2, %v1417_v56  ;;  %v1420_v36 = vmul.f32 %v3327_v26, %v2465_v30 }
 0x16a   : > { %v2469_v7 = vpop.eup %2468  ;;  %1773 = vst [vmem:[%s2900_s7 + $0x198] sm:$0xff] %v1709_v55  ;;  %v1707_v9 = vadd.f32 %v1643_v58, %v1579_v61  ;;  %v1584_v23 = vmul.f32 %v2459_v39, %v1520_v16  ;;  %v1518_v10 = vadd.f32 %v3336_v2, %v1449_v62  ;;  %v1452_v4 = vmul.f32 %v3327_v26, %v2467_v15 }
 0x16b   : > { %v2471_v18 = vpop.eup %2470  ;;  %1739 = vst [vmem:[%s2900_s7 + $0x88] sm:$0xff] %v1675_v3  ;;  %v1680_v6 = vadd.f32 %v1616_v59, %v1552_v63  ;;  %v1550_v53 = vmul.f32 %v2461_v60, %v1486_v8  ;;  %v1489_v33 = vadd.f32 %v3336_v2, %v1420_v36  ;;  %v1418_v20 = vmul.f32 %v3327_v26, %v2469_v7  ;;  %v1620_v8 = vld [vmem:[%s2851_s28 + $0xd0] sm:$0xff] }
 0x16c   : > { %v2473_v29 = vpop.eup %2472  ;;  %1771 = vst [vmem:[%s2900_s7 + $0x188] sm:$0xff] %v1707_v9  ;;  %v1712_v44 = vadd.f32 %v1648_v5, %v1584_v23  ;;  %v1582_v38 = vmul.f32 %v2463_v25, %v1518_v10  ;;  %v1521_v34 = vadd.f32 %v3336_v2, %v1452_v4  ;;  %v1253_v27 = vadd.f32 1.0, %v2471_v18  ;;  %v1652_v23 = vld [vmem:[%s2851_s28 + $0x1d0] sm:$0xff] }
 0x16d   : > { %v2475_v31 = vpop.eup %2474  ;;  %1744 = vst [vmem:[%s2900_s7 + $0xb0] sm:$0xff] %v1680_v6  ;;  %v1678_v39 = vadd.f32 %v1614_v41, %v1550_v53  ;;  %v1553_v43 = vmul.f32 %v2465_v30, %v1489_v33  ;;  %v1487_v32 = vadd.f32 %v3336_v2, %v1418_v20  ;;  %v1226_v45 = vadd.f32 1.0, %v2473_v29  ;;  %v1618_v53 = vld [vmem:[%s2851_s28 + $0xc0] sm:$0xff] }
 0x16e   : > { %v2477_v11 = vpop.eup %2476  ;;  %1776 = vst [vmem:[%s2900_s7 + $0x1b0] sm:$0xff] %v1712_v44  ;;  %v1710_v60 = vadd.f32 %v1646_v13, %v1582_v38  ;;  %v1585_v22 = vmul.f32 %v2467_v15, %v1521_v34  ;;  %2478 = vrcp.f32 %v1253_v27  ;;  %v1258_v57 = vadd.f32 1.0, %v2475_v31  ;;  %v1647_v15 = vld [vmem:[%s2851_s28 + $0x1a8] sm:$0xff] }
 0x16f   : > { %1742 = vst [vmem:[%s2900_s7 + $0xa0] sm:$0xff] %v1678_v39  ;;  %v1681_v14 = vadd.f32 %v1617_v50, %v1553_v43  ;;  %v1551_v17 = vmul.f32 %v2469_v7, %v1487_v32  ;;  %2480 = vrcp.f32 %v1226_v45  ;;  %v1224_v25 = vadd.f32 1.0, %v2477_v11 }
 0x170   : > { %1774 = vst [vmem:[%s2900_s7 + $0x1a0] sm:$0xff] %v1710_v60  ;;  %v1713_v28 = vadd.f32 %v1649_v0, %v1585_v22  ;;  %2482 = vrcp.f32 %v1258_v57  ;;  %v2098_v54 = vmul.f32 -1.442695, %v3166_v47  ;;  %v2064_v42 = vmul.f32 -1.442695, %v3173_v49 }
 0x171   : > { %1745 = vst [vmem:[%s2900_s7 + $0xb8] sm:$0xff] %v1681_v14  ;;  %v1679_v58 = vadd.f32 %v1615_v24, %v1551_v17  ;;  %2484 = vrcp.f32 %v1224_v25  ;;  %v2096_v56 = vmul.f32 -1.442695, %v3183_v52  ;;  %v2069_v30 = vmul.f32 -1.442695, %v3193_v12 }
 0x172   : > { %1777 = vst [vmem:[%s2900_s7 + $0x1b8] sm:$0xff] %v1713_v28  ;;  %2486 = vpow2.f32 %v3341_v37  ;;  %v2101_v55 = vmul.f32 -1.442695, %v3256_v35  ;;  %v2067_v47 = vmul.f32 -1.442695, %v3259_v1 }
 0x173   : > { %1743 = vst [vmem:[%s2900_s7 + $0xa8] sm:$0xff] %v1679_v58  ;;  %2488 = vpow2.f32 %v3347_v21  ;;  %v2099_v61 = vmul.f32 -1.442695, %v3263_v46  ;;  %v2070_v49 = vmul.f32 -1.442695, %v3266_v51 }
 0x174   : > { %2490 = vpow2.f32 %v2098_v54  ;;  %v2102_v52 = vmul.f32 -1.442695, %v3276_v19  ;;  %v2068_v35 = vmul.f32 -1.442695, %v3286_v48  ;;  %v2100_v46 = vmul.f32 -1.442695, %v3293_v40 }
 0x175   : > { %2492 = vpow2.f32 %v2064_v42 }
 0x176   : > { %2494 = vpow2.f32 %v2096_v56 }
 0x177   : > { %2496 = vpow2.f32 %v2069_v30 }
 0x178   : > { %v2479_v37 = vpop.eup %2478  ;;  %2498 = vpow2.f32 %v2101_v55 }
 0x179   : > { %v2481_v21 = vpop.eup %2480  ;;  %v1450_v12 = vmul.f32 %v3327_v26, %v2479_v37  ;;  %2500 = vpow2.f32 %v2067_v47 }
 0x17a   : > { %v2483_v59 = vpop.eup %2482  ;;  %v1423_v1 = vmul.f32 %v3327_v26, %v2481_v21  ;;  %2502 = vpow2.f32 %v2099_v61 }
 0x17b   : > { %v2485_v16 = vpop.eup %2484  ;;  %v1519_v51 = vadd.f32 %v3336_v2, %v1450_v12  ;;  %v1455_v62 = vmul.f32 %v3327_v26, %v2483_v59  ;;  %2504 = vpow2.f32 %v2070_v49 }
 0x17c   : > { %v2487_v19 = vpop.eup %2486  ;;  %v1492_v3 = vadd.f32 %v3336_v2, %v1423_v1  ;;  %v1421_v48 = vmul.f32 %v3327_v26, %v2485_v16  ;;  %2506 = vpow2.f32 %v2102_v52 }
 0x17d   : > { %v2489_v63 = vpop.eup %2488  ;;  %v1583_v5 = vmul.f32 %v2479_v37, %v1519_v51  ;;  %v1524_v40 = vadd.f32 %v3336_v2, %v1455_v62  ;;  %v1256_v36 = vadd.f32 1.0, %v2487_v19  ;;  %2508 = vpow2.f32 %v2068_v35  ;;  %v1650_v37 = vld [vmem:[%s2851_s28 + $0x1c0] sm:$0xff]  ;;  %v1653_v62 = vld [vmem:[%s2851_s28 + $0x1d8] sm:$0xff] }
 0x17e   : > { %v2491_v7 = vpop.eup %2490  ;;  %v1556_v9 = vmul.f32 %v2481_v21, %v1492_v3  ;;  %v1490_v41 = vadd.f32 %v3336_v2, %v1421_v48  ;;  %v1227_v10 = vadd.f32 1.0, %v2489_v63  ;;  %2510 = vpow2.f32 %v2100_v46 }
 0x17f   : > { %v2493_v4 = vpop.eup %2492  ;;  %v1711_v18 = vadd.f32 %v1647_v15, %v1583_v5  ;;  %v1588_v6 = vmul.f32 %v2483_v59, %v1524_v40  ;;  %2512 = vrcp.f32 %v1256_v36  ;;  %v1259_v13 = vadd.f32 1.0, %v2491_v7  ;;  %v1621_v59 = vld [vmem:[%s2851_s28 + $0xd8] sm:$0xff]  ;;  %v1619_v5 = vld [vmem:[%s2851_s28 + $0xc8] sm:$0xff] }
 0x180   : > { %v2495_v33 = vpop.eup %2494  ;;  %v1684_v20 = vadd.f32 %v1620_v8, %v1556_v9  ;;  %v1554_v29 = vmul.f32 %v2485_v16, %v1490_v41  ;;  %2514 = vrcp.f32 %v1227_v10  ;;  %v1225_v44 = vadd.f32 1.0, %v2493_v4 }
 0x181   : > { %v2497_v38 = vpop.eup %2496  ;;  %1775 = vst [vmem:[%s2900_s7 + $0x1a8] sm:$0xff] %v1711_v18  ;;  %v1716_v50 = vadd.f32 %v1652_v23, %v1588_v6  ;;  %2516 = vrcp.f32 %v1259_v13  ;;  %v1257_v34 = vadd.f32 1.0, %v2495_v33  ;;  %v1651_v23 = vld [vmem:[%s2851_s28 + $0x1c8] sm:$0xff] }
 0x182   : > { %v2499_v27 = vpop.eup %2498  ;;  %1748 = vst [vmem:[%s2900_s7 + $0xd0] sm:$0xff] %v1684_v20  ;;  %v1682_v31 = vadd.f32 %v1618_v53, %v1554_v29  ;;  %2518 = vrcp.f32 %v1225_v44  ;;  %v1230_v39 = vadd.f32 1.0, %v2497_v38  ;;  %v1624_v53 = vld [vmem:[%s2851_s28 + $0xf0] sm:$0xff] }
 0x183   : > { %v2501_v43 = vpop.eup %2500  ;;  %1780 = vst [vmem:[%s2900_s7 + $0x1d0] sm:$0xff] %v1716_v50  ;;  %2520 = vrcp.f32 %v1257_v34  ;;  %v1262_v0 = vadd.f32 1.0, %v2499_v27  ;;  %v1656_v38 = vld [vmem:[%s2851_s28 + $0x1f0] sm:$0xff] }
 0x184   : > { %v2503_v32 = vpop.eup %2502  ;;  %1746 = vst [vmem:[%s2900_s7 + $0xc0] sm:$0xff] %v1682_v31  ;;  %2522 = vrcp.f32 %v1230_v39  ;;  %v1228_v45 = vadd.f32 1.0, %v2501_v43  ;;  %v1622_v43 = vld [vmem:[%s2851_s28 + $0xe0] sm:$0xff] }
 0x185   : > { %v2505_v11 = vpop.eup %2504  ;;  %2524 = vrcp.f32 %v1262_v0  ;;  %v1260_v60 = vadd.f32 1.0, %v2503_v32 }
 0x186   : > { %v2507_v22 = vpop.eup %2506  ;;  %2526 = vrcp.f32 %v1228_v45  ;;  %v1231_v24 = vadd.f32 1.0, %v2505_v11 }
 0x187   : > { %v2509_v57 = vpop.eup %2508  ;;  %2528 = vrcp.f32 %v1260_v60  ;;  %v1263_v14 = vadd.f32 1.0, %v2507_v22  ;;  %v1654_v22 = vld [vmem:[%s2851_s28 + $0x1e0] sm:$0xff] }
 0x188   : > { %v2511_v17 = vpop.eup %2510  ;;  %2530 = vrcp.f32 %v1231_v24  ;;  %v1229_v25 = vadd.f32 1.0, %v2509_v57 }
 0x189   : > { %v2513_v28 = vpop.eup %2512  ;;  %2532 = vrcp.f32 %v1263_v14  ;;  %v1261_v54 = vadd.f32 1.0, %v2511_v17 }
 0x18a   : > { %v2515_v58 = vpop.eup %2514  ;;  %v1453_v42 = vmul.f32 %v3327_v26, %v2513_v28  ;;  %2534 = vrcp.f32 %v1229_v25  ;;  %v1625_v25 = vld [vmem:[%s2851_s28 + $0xf8] sm:$0xff] }
 0x18b   : > { %v2517_v56 = vpop.eup %2516  ;;  %v1424_v30 = vmul.f32 %v3327_v26, %v2515_v58  ;;  %2536 = vrcp.f32 %v1261_v54 }
 0x18c   : > { %v2519_v55 = vpop.eup %2518  ;;  %v1522_v47 = vadd.f32 %v3336_v2, %v1453_v42  ;;  %v1456_v61 = vmul.f32 %v3327_v26, %v2517_v56 }
 0x18d   : > { %v2521_v49 = vpop.eup %2520  ;;  %v1493_v52 = vadd.f32 %v3336_v2, %v1424_v30  ;;  %v1422_v21 = vmul.f32 %v3327_v26, %v2519_v55 }
 0x18e   : > { %v2523_v12 = vpop.eup %2522  ;;  %v1586_v35 = vmul.f32 %v2513_v28, %v1522_v47  ;;  %v1525_v1 = vadd.f32 %v3336_v2, %v1456_v61  ;;  %v1454_v46 = vmul.f32 %v3327_v26, %v2521_v49  ;;  %v1623_v61 = vld [vmem:[%s2851_s28 + $0xe8] sm:$0xff] }
 0x18f   : > { %v2525_v16 = vpop.eup %2524  ;;  %v1557_v51 = vmul.f32 %v2515_v58, %v1493_v52  ;;  %v1491_v19 = vadd.f32 %v3336_v2, %v1422_v21  ;;  %v1427_v15 = vmul.f32 %v3327_v26, %v2523_v12 }
 0x190   : > { %v2527_v3 = vpop.eup %2526  ;;  %v1714_v48 = vadd.f32 %v1650_v37, %v1586_v35  ;;  %v1589_v63 = vmul.f32 %v2517_v56, %v1525_v1  ;;  %v1523_v8 = vadd.f32 %v3336_v2, %v1454_v46  ;;  %v1459_v40 = vmul.f32 %v3327_v26, %v2525_v16  ;;  %v1657_v56 = vld [vmem:[%s2851_s28 + $0x1f8] sm:$0xff] }
 0x191   : > { %v2529_v36 = vpop.eup %2528  ;;  %v1685_v7 = vadd.f32 %v1621_v59, %v1557_v51  ;;  %v1555_v9 = vmul.f32 %v2519_v55, %v1491_v19  ;;  %v1496_v41 = vadd.f32 %v3336_v2, %v1427_v15  ;;  %v1425_v10 = vmul.f32 %v3327_v26, %v2527_v3 }
 0x192   : > { %v2531_v4 = vpop.eup %2530  ;;  %1778 = vst [vmem:[%s2900_s7 + $0x1c0] sm:$0xff] %v1714_v48  ;;  %v1717_v18 = vadd.f32 %v1653_v62, %v1589_v63  ;;  %v1587_v6 = vmul.f32 %v2521_v49, %v1523_v8  ;;  %v1528_v13 = vadd.f32 %v3336_v2, %v1459_v40  ;;  %v1457_v33 = vmul.f32 %v3327_v26, %v2529_v36 }
 0x193   : > { %v2533_v20 = vpop.eup %2532  ;;  %1749 = vst [vmem:[%s2900_s7 + $0xd8] sm:$0xff] %v1685_v7  ;;  %v1683_v29 = vadd.f32 %v1619_v5, %v1555_v9  ;;  %v1560_v44 = vmul.f32 %v2523_v12, %v1496_v41  ;;  %v1494_v50 = vadd.f32 %v3336_v2, %v1425_v10  ;;  %v1428_v34 = vmul.f32 %v3327_v26, %v2531_v4 }
 0x194   : > { %v2535_v27 = vpop.eup %2534  ;;  %1781 = vst [vmem:[%s2900_s7 + $0x1d8] sm:$0xff] %v1717_v18  ;;  %v1715_v31 = vadd.f32 %v1651_v23, %v1587_v6  ;;  %v1592_v39 = vmul.f32 %v2525_v16, %v1528_v13  ;;  %v1526_v0 = vadd.f32 %v3336_v2, %v1457_v33  ;;  %v1460_v32 = vmul.f32 %v3327_v26, %v2533_v20 }
 0x195   : > { %v2537_v45 = vpop.eup %2536  ;;  %1747 = vst [vmem:[%s2900_s7 + $0xc8] sm:$0xff] %v1683_v29  ;;  %v1688_v11 = vadd.f32 %v1624_v53, %v1560_v44  ;;  %v1558_v60 = vmul.f32 %v2527_v3, %v1494_v50  ;;  %v1497_v24 = vadd.f32 %v3336_v2, %v1428_v34  ;;  %v1426_v57 = vmul.f32 %v3327_v26, %v2535_v27 }
 0x196   : > { %1779 = vst [vmem:[%s2900_s7 + $0x1c8] sm:$0xff] %v1715_v31  ;;  %v1720_v14 = vadd.f32 %v1656_v38, %v1592_v39  ;;  %v1590_v17 = vmul.f32 %v2529_v36, %v1526_v0  ;;  %v1529_v28 = vadd.f32 %v3336_v2, %v1460_v32  ;;  %v1458_v54 = vmul.f32 %v3327_v26, %v2537_v45  ;;  %v1655_v26 = vld [vmem:[%s2851_s28 + $0x1e8] sm:$0xff] }
 0x197   : > { %1752 = vst [vmem:[%s2900_s7 + $0xf0] sm:$0xff] %v1688_v11  ;;  %v1686_v58 = vadd.f32 %v1622_v43, %v1558_v60  ;;  %v1561_v42 = vmul.f32 %v2531_v4, %v1497_v24  ;;  %v1495_v30 = vadd.f32 %v3336_v2, %v1426_v57 }
 0x198   : > { %1784 = vst [vmem:[%s2900_s7 + $0x1f0] sm:$0xff] %v1720_v14  ;;  %v1718_v55 = vadd.f32 %v1654_v22, %v1590_v17  ;;  %v1593_v47 = vmul.f32 %v2533_v20, %v1529_v28  ;;  %v1527_v49 = vadd.f32 %v3336_v2, %v1458_v54 }
 0x199   : > { %1750 = vst [vmem:[%s2900_s7 + $0xe0] sm:$0xff] %v1686_v58  ;;  %v1689_v37 = vadd.f32 %v1625_v25, %v1561_v42  ;;  %v1559_v52 = vmul.f32 %v2535_v27, %v1495_v30 }
 0x19a   : > { %1782 = vst [vmem:[%s2900_s7 + $0x1e0] sm:$0xff] %v1718_v55  ;;  %v1721_v21 = vadd.f32 %v1657_v56, %v1593_v47  ;;  %v1591_v12 = vmul.f32 %v2537_v45, %v1527_v49 }
 0x19b   : > { %1753 = vst [vmem:[%s2900_s7 + $0xf8] sm:$0xff] %v1689_v37  ;;  %v1687_v35 = vadd.f32 %v1623_v61, %v1559_v52 }
 0x19c   : > { %1785 = vst [vmem:[%s2900_s7 + $0x1f8] sm:$0xff] %v1721_v21  ;;  %v1719_v59 = vadd.f32 %v1655_v26, %v1591_v12 }
 0x19d   : > { %1751 = vst [vmem:[%s2900_s7 + $0xe8] sm:$0xff] %v1687_v35 }
 0x19e   : > { %1783 = vst [vmem:[%s2900_s7 + $0x1e8] sm:$0xff] %v1719_v59 }
 0x19f PF: > { %s16_s22 = sadd.s32 1, %s2579_s22   ;;  %s3496_s18 = smov %s2571_s20 }
 0x1a0   : > { %p13_p7 = scmp.ge.s32.totalorder %s16_s22, 6   ;;  %s3497_s19 = smov %s2575_s21 }
 0x1a1   : > { %s3498_s20 = smov %s3501_s23  ;;  %s3499_s21 = smov %s3505_s24 }
 0x1a2   :  { %15 = sbr.rel (!%p13_p7) target bundleno = 3 (0x3), region = 81 }

</bundles_post_ra>
